<compile_context>
chip_gen: v5e
topology: v5e:2x2
jax: 0.10.0
libtpu: 0.0.40
codegen_flags: <defaults>
</compile_context>

<pallas_src>
import functools

import jax
import jax.numpy as jnp
from jax.experimental import pallas as pl
from jax.experimental.pallas import tpu as pltpu


def _prednet_kernel(x_ref, wih_ref, whh_ref, b_ref, wfc_ref, bfc_ref,
                    y_ref, hc_ref, *, seq_len, batch, hidden):
    """Whole forward pass in one kernel invocation (batch-major rows).

    x_ref:  (B*T, I)  row b*T+t is (batch b, timestep t)
    y_ref:  (B*T, O)  same row order (free reshape to (B,T,O) in the wrapper)
    hc_ref: (B, 2H)   [h_n | c_n] fused, lane-dense single store
    """
    T, B, H = seq_len, batch, hidden

    # (1) Batched input projection for ALL timesteps: one big MXU op.
    gx = (jnp.dot(x_ref[...], wih_ref[...], preferred_element_type=jnp.float32)
          + b_ref[...])                                   # (B*T, 4H), batch-major
    # Layout-preserving split of the sublane dim: (B*T,4H) -> (B,T,4H).
    gx3 = gx.reshape(B, T, 4 * H)
    whh = whh_ref[...]                                    # (H, 4H), loaded once

    h = jnp.zeros((B, H), jnp.float32)
    c = jnp.zeros((B, H), jnp.float32)
    hs = []                                               # register-resident hidden states

    # (2) Sequential recurrence: only the hidden-state projection per step.
    #     T is small & static -> fully unrolled static loop, static slices.
    for t in range(T):
        gates = gx3[:, t, :] + jnp.dot(h, whh,
                                       preferred_element_type=jnp.float32)  # (B, 4H)
        # 2 EUP pushes per step instead of 4: full-width sigmoid + g-only tanh.
        sig = jax.nn.sigmoid(gates)                       # covers i, f, (g wasted), o
        g_g = jnp.tanh(gates[:, 2 * H:3 * H])
        i_g = sig[:, 0 * H:1 * H]
        f_g = sig[:, 1 * H:2 * H]
        o_g = sig[:, 3 * H:4 * H]
        c = f_g * c + i_g * g_g
        h = o_g * jnp.tanh(c)
        hs.append(h)

    # (3) Stack hidden states batch-major ((b,t) -> row b*T+t) and run the FC
    #     as ONE matmul with a single bulk store. (Dropout = identity in eval.)
    hs_all = jnp.stack(hs, axis=1).reshape(B * T, H)      # (B*T, H)
    y_ref[...] = (jnp.dot(hs_all, wfc_ref[...],
                          preferred_element_type=jnp.float32)
                  + bfc_ref[...]).astype(y_ref.dtype)
    hc_ref[...] = jnp.concatenate([h, c], axis=-1).astype(hc_ref.dtype)


@jax.jit
def prednet_forward(x, w_ih, w_hh, b_ih, b_hh, w_fc, b_fc):
    """x: (B, T, I) float32.  Returns (y (B,T,O), (h_n (1,B,H), c_n (1,B,H)))."""
    B, T, I = x.shape
    H = w_hh.shape[1]
    O = w_fc.shape[0]

    # Pre-transpose (tiny) weights so the kernel does plain (M,K)@(K,N) matmuls.
    wih_t = w_ih.T                       # (I, 4H)
    whh_t = w_hh.T                       # (H, 4H)
    b = (b_ih + b_hh).reshape(1, 4 * H)  # (1, 4H)  combined bias
    wfc_t = w_fc.T                       # (H, O)
    bfc = b_fc.reshape(1, O)             # (1, O)

    # Batch-major flattened rows: pure reshape, NO transpose around the kernel.
    x_flat = x.reshape(B * T, I)

    kernel = functools.partial(_prednet_kernel, seq_len=T, batch=B, hidden=H)

    grid_spec = pltpu.PrefetchScalarGridSpec(
        num_scalar_prefetch=0,
        grid=(1,),                                   # single invocation
        in_specs=[
            pl.BlockSpec((B * T, I), lambda i: (0, 0)),     # x (all timesteps)
            pl.BlockSpec((I, 4 * H), lambda i: (0, 0)),     # W_ih^T
            pl.BlockSpec((H, 4 * H), lambda i: (0, 0)),     # W_hh^T
            pl.BlockSpec((1, 4 * H), lambda i: (0, 0)),     # b_ih + b_hh
            pl.BlockSpec((H, O), lambda i: (0, 0)),         # W_fc^T
            pl.BlockSpec((1, O), lambda i: (0, 0)),         # b_fc
        ],
        out_specs=[
            pl.BlockSpec((B * T, O), lambda i: (0, 0)),     # y (all timesteps)
            pl.BlockSpec((B, 2 * H), lambda i: (0, 0)),     # [h_n | c_n]
        ],
    )

    y_flat, hc = pl.pallas_call(
        kernel,
        out_shape=(
            jax.ShapeDtypeStruct((B * T, O), jnp.float32),
            jax.ShapeDtypeStruct((B, 2 * H), jnp.float32),
        ),
        grid_spec=grid_spec,
        compiler_params=pltpu.CompilerParams(
            dimension_semantics=("arbitrary",)),
    )(x_flat, wih_t, whh_t, b, wfc_t, bfc)

    y = y_flat.reshape(B, T, O)                       # free reshape, no transpose
    h_n = hc[:, :H][None]                             # (1, B, H)
    c_n = hc[:, H:][None]                             # (1, B, H)
    return y, (h_n, c_n)


def prednet_reference(x, w_ih, w_hh, b_ih, b_hh, w_fc, b_fc):
    """Pure-JAX reference matching PyTorch nn.LSTM(batch_first) + Linear."""
    B, T, I = x.shape
    H = w_hh.shape[1]

    def step(carry, x_t):
        h, c = carry
        gates = x_t @ w_ih.T + b_ih + h @ w_hh.T + b_hh
        i = jax.nn.sigmoid(gates[:, 0 * H:1 * H])
        f = jax.nn.sigmoid(gates[:, 1 * H:2 * H])
        g = jnp.tanh(gates[:, 2 * H:3 * H])
        o = jax.nn.sigmoid(gates[:, 3 * H:4 * H])
        c = f * c + i * g
        h = o * jnp.tanh(c)
        return (h, c), h

    h0 = jnp.zeros((B, H), jnp.float32)
    c0 = jnp.zeros((B, H), jnp.float32)
    (h_n, c_n), hs = jax.lax.scan(step, (h0, c0), jnp.transpose(x, (1, 0, 2)))
    hs = jnp.transpose(hs, (1, 0, 2))              # (B, T, H)
    y = hs @ w_fc.T + b_fc
    return y, (h_n[None], c_n[None])


if __name__ == "__main__":
    # Small shapes implied by the module: seq of feature vectors.
    B, T, I, H, O = 2, 8, 16, 32, 8

    key = jax.random.PRNGKey(0)
    ks = jax.random.split(key, 7)
    bound = 1.0 / jnp.sqrt(H)  # PyTorch default uniform(-1/sqrt(H), 1/sqrt(H))

    x = jax.random.normal(ks[0], (B, T, I), jnp.float32)
    w_ih = jax.random.uniform(ks[1], (4 * H, I), jnp.float32, -bound, bound)
    w_hh = jax.random.uniform(ks[2], (4 * H, H), jnp.float32, -bound, bound)
    b_ih = jax.random.uniform(ks[3], (4 * H,), jnp.float32, -bound, bound)
    b_hh = jax.random.uniform(ks[4], (4 * H,), jnp.float32, -bound, bound)
    w_fc = jax.random.uniform(ks[5], (O, H), jnp.float32, -bound, bound)
    b_fc = jax.random.uniform(ks[6], (O,), jnp.float32, -bound, bound)

    y, (h_n, c_n) = prednet_forward(x, w_ih, w_hh, b_ih, b_hh, w_fc, b_fc)
    jax.block_until_ready((y, h_n, c_n))

    y_ref, (h_ref, c_ref) = prednet_reference(x, w_ih, w_hh, b_ih, b_hh, w_fc, b_fc)
    assert y.shape == (B, T, O) and h_n.shape == (1, B, H) and c_n.shape == (1, B, H)
    assert jnp.allclose(y, y_ref, atol=1e-5, rtol=1e-5)
    assert jnp.allclose(h_n, h_ref, atol=1e-5, rtol=1e-5)
    assert jnp.allclose(c_n, c_ref, atol=1e-5, rtol=1e-5)

    print("KERNEL_OK")
</pallas_src>

<mosaic_0001>
module attributes {stable_mosaic.version = 11 : i64} {
  func.func @_prednet_kernel(%arg0: i32, %arg1: memref<16x16xf32, #tpu.memory_space<vmem>>, %arg2: memref<16x128xf32, #tpu.memory_space<vmem>>, %arg3: memref<32x128xf32, #tpu.memory_space<vmem>>, %arg4: memref<1x128xf32, #tpu.memory_space<vmem>>, %arg5: memref<32x8xf32, #tpu.memory_space<vmem>>, %arg6: memref<1x8xf32, #tpu.memory_space<vmem>>, %arg7: memref<16x8xf32, #tpu.memory_space<vmem>>, %arg8: memref<2x64xf32, #tpu.memory_space<vmem>>) attributes {dimension_semantics = [#tpu.dimension_semantics<arbitrary>], iteration_bounds = array<i64: 1>, scalar_prefetch = 0 : i64, scratch_operands = 0 : i64, tpu.core_type = #tpu.core_type<tc>, window_params = [{pipeline_mode = #tpu.pipeline_mode<synchronous>, transform_indices = @transform_0, window_bounds = array<i64: 16, 16>}, {pipeline_mode = #tpu.pipeline_mode<synchronous>, transform_indices = @transform_1, window_bounds = array<i64: 16, 128>}, {pipeline_mode = #tpu.pipeline_mode<synchronous>, transform_indices = @transform_2, window_bounds = array<i64: 32, 128>}, {pipeline_mode = #tpu.pipeline_mode<synchronous>, transform_indices = @transform_3, window_bounds = array<i64: 1, 128>}, {pipeline_mode = #tpu.pipeline_mode<synchronous>, transform_indices = @transform_4, window_bounds = array<i64: 32, 8>}, {pipeline_mode = #tpu.pipeline_mode<synchronous>, transform_indices = @transform_5, window_bounds = array<i64: 1, 8>}, {pipeline_mode = #tpu.pipeline_mode<synchronous>, transform_indices = @transform_6, window_bounds = array<i64: 16, 8>}, {pipeline_mode = #tpu.pipeline_mode<synchronous>, transform_indices = @transform_7, window_bounds = array<i64: 2, 64>}]} {
    %c0 = arith.constant 0 : index
    %c0_0 = arith.constant 0 : index
    %0 = vector.load %arg1[%c0, %c0_0] : memref<16x16xf32, #tpu.memory_space<vmem>>, vector<16x16xf32>
    %c0_1 = arith.constant 0 : index
    %c0_2 = arith.constant 0 : index
    %1 = vector.load %arg2[%c0_1, %c0_2] : memref<16x128xf32, #tpu.memory_space<vmem>>, vector<16x128xf32>
    %cst = arith.constant dense<0.000000e+00> : vector<16x128xf32>
    %2 = tpu.matmul %0, %1, %cst {dimension_numbers = #tpu.dot_dimension_numbers<[1], [0], [0], [1], [0, 0, 1, 1], [], []>} : vector<16x16xf32>, vector<16x128xf32>, vector<16x128xf32> -> vector<16x128xf32>
    %c0_3 = arith.constant 0 : index
    %c0_4 = arith.constant 0 : index
    %3 = vector.load %arg4[%c0_3, %c0_4] : memref<1x128xf32, #tpu.memory_space<vmem>>, vector<1x128xf32>
    %4 = vector.broadcast %3 : vector<1x128xf32> to vector<16x128xf32>
    %5 = arith.addf %2, %4 : vector<16x128xf32>
    %6 = vector.shape_cast %5 : vector<16x128xf32> to vector<2x8x128xf32>
    %c0_5 = arith.constant 0 : index
    %c0_6 = arith.constant 0 : index
    %7 = vector.load %arg3[%c0_5, %c0_6] : memref<32x128xf32, #tpu.memory_space<vmem>>, vector<32x128xf32>
    %cst_7 = arith.constant 0.000000e+00 : f32
    %8 = vector.broadcast %cst_7 : f32 to vector<2x32xf32>
    %cst_8 = arith.constant 0.000000e+00 : f32
    %9 = vector.broadcast %cst_8 : f32 to vector<2x32xf32>
    %10 = vector.extract_strided_slice %6 {offsets = [0, 0, 0], sizes = [2, 1, 128], strides = [1, 1, 1]} : vector<2x8x128xf32> to vector<2x1x128xf32>
    %11 = vector.shape_cast %10 : vector<2x1x128xf32> to vector<2x128xf32>
    %cst_9 = arith.constant dense<0.000000e+00> : vector<2x128xf32>
    %12 = tpu.matmul %8, %7, %cst_9 {dimension_numbers = #tpu.dot_dimension_numbers<[1], [0], [0], [1], [0, 0, 1, 1], [], []>} : vector<2x32xf32>, vector<32x128xf32>, vector<2x128xf32> -> vector<2x128xf32>
    %13 = arith.addf %11, %12 : vector<2x128xf32>
    %14 = arith.negf %13 : vector<2x128xf32>
    %15 = math.exp %14 : vector<2x128xf32>
    %cst_10 = arith.constant 1.000000e+00 : f32
    %16 = vector.broadcast %cst_10 : f32 to vector<2x128xf32>
    %17 = arith.addf %16, %15 : vector<2x128xf32>
    %18 = arith.divf %16, %17 : vector<2x128xf32>
    %19 = vector.extract_strided_slice %13 {offsets = [0, 64], sizes = [2, 32], strides = [1, 1]} : vector<2x128xf32> to vector<2x32xf32>
    %20 = math.tanh %19 : vector<2x32xf32>
    %21 = vector.extract_strided_slice %18 {offsets = [0, 0], sizes = [2, 32], strides = [1, 1]} : vector<2x128xf32> to vector<2x32xf32>
    %22 = vector.extract_strided_slice %18 {offsets = [0, 32], sizes = [2, 32], strides = [1, 1]} : vector<2x128xf32> to vector<2x32xf32>
    %23 = vector.extract_strided_slice %18 {offsets = [0, 96], sizes = [2, 32], strides = [1, 1]} : vector<2x128xf32> to vector<2x32xf32>
    %24 = arith.mulf %22, %9 : vector<2x32xf32>
    %25 = arith.mulf %21, %20 : vector<2x32xf32>
    %26 = arith.addf %24, %25 : vector<2x32xf32>
    %27 = math.tanh %26 : vector<2x32xf32>
    %28 = arith.mulf %23, %27 : vector<2x32xf32>
    %29 = vector.extract_strided_slice %6 {offsets = [0, 1, 0], sizes = [2, 1, 128], strides = [1, 1, 1]} : vector<2x8x128xf32> to vector<2x1x128xf32>
    %30 = vector.shape_cast %29 : vector<2x1x128xf32> to vector<2x128xf32>
    %cst_11 = arith.constant dense<0.000000e+00> : vector<2x128xf32>
    %31 = tpu.matmul %28, %7, %cst_11 {dimension_numbers = #tpu.dot_dimension_numbers<[1], [0], [0], [1], [0, 0, 1, 1], [], []>} : vector<2x32xf32>, vector<32x128xf32>, vector<2x128xf32> -> vector<2x128xf32>
    %32 = arith.addf %30, %31 : vector<2x128xf32>
    %33 = arith.negf %32 : vector<2x128xf32>
    %34 = math.exp %33 : vector<2x128xf32>
    %cst_12 = arith.constant 1.000000e+00 : f32
    %35 = vector.broadcast %cst_12 : f32 to vector<2x128xf32>
    %36 = arith.addf %35, %34 : vector<2x128xf32>
    %37 = arith.divf %35, %36 : vector<2x128xf32>
    %38 = vector.extract_strided_slice %32 {offsets = [0, 64], sizes = [2, 32], strides = [1, 1]} : vector<2x128xf32> to vector<2x32xf32>
    %39 = math.tanh %38 : vector<2x32xf32>
    %40 = vector.extract_strided_slice %37 {offsets = [0, 0], sizes = [2, 32], strides = [1, 1]} : vector<2x128xf32> to vector<2x32xf32>
    %41 = vector.extract_strided_slice %37 {offsets = [0, 32], sizes = [2, 32], strides = [1, 1]} : vector<2x128xf32> to vector<2x32xf32>
    %42 = vector.extract_strided_slice %37 {offsets = [0, 96], sizes = [2, 32], strides = [1, 1]} : vector<2x128xf32> to vector<2x32xf32>
    %43 = arith.mulf %41, %26 : vector<2x32xf32>
    %44 = arith.mulf %40, %39 : vector<2x32xf32>
    %45 = arith.addf %43, %44 : vector<2x32xf32>
    %46 = math.tanh %45 : vector<2x32xf32>
    %47 = arith.mulf %42, %46 : vector<2x32xf32>
    %48 = vector.extract_strided_slice %6 {offsets = [0, 2, 0], sizes = [2, 1, 128], strides = [1, 1, 1]} : vector<2x8x128xf32> to vector<2x1x128xf32>
    %49 = vector.shape_cast %48 : vector<2x1x128xf32> to vector<2x128xf32>
    %cst_13 = arith.constant dense<0.000000e+00> : vector<2x128xf32>
    %50 = tpu.matmul %47, %7, %cst_13 {dimension_numbers = #tpu.dot_dimension_numbers<[1], [0], [0], [1], [0, 0, 1, 1], [], []>} : vector<2x32xf32>, vector<32x128xf32>, vector<2x128xf32> -> vector<2x128xf32>
    %51 = arith.addf %49, %50 : vector<2x128xf32>
    %52 = arith.negf %51 : vector<2x128xf32>
    %53 = math.exp %52 : vector<2x128xf32>
    %cst_14 = arith.constant 1.000000e+00 : f32
    %54 = vector.broadcast %cst_14 : f32 to vector<2x128xf32>
    %55 = arith.addf %54, %53 : vector<2x128xf32>
    %56 = arith.divf %54, %55 : vector<2x128xf32>
    %57 = vector.extract_strided_slice %51 {offsets = [0, 64], sizes = [2, 32], strides = [1, 1]} : vector<2x128xf32> to vector<2x32xf32>
    %58 = math.tanh %57 : vector<2x32xf32>
    %59 = vector.extract_strided_slice %56 {offsets = [0, 0], sizes = [2, 32], strides = [1, 1]} : vector<2x128xf32> to vector<2x32xf32>
    %60 = vector.extract_strided_slice %56 {offsets = [0, 32], sizes = [2, 32], strides = [1, 1]} : vector<2x128xf32> to vector<2x32xf32>
    %61 = vector.extract_strided_slice %56 {offsets = [0, 96], sizes = [2, 32], strides = [1, 1]} : vector<2x128xf32> to vector<2x32xf32>
    %62 = arith.mulf %60, %45 : vector<2x32xf32>
    %63 = arith.mulf %59, %58 : vector<2x32xf32>
    %64 = arith.addf %62, %63 : vector<2x32xf32>
    %65 = math.tanh %64 : vector<2x32xf32>
    %66 = arith.mulf %61, %65 : vector<2x32xf32>
    %67 = vector.extract_strided_slice %6 {offsets = [0, 3, 0], sizes = [2, 1, 128], strides = [1, 1, 1]} : vector<2x8x128xf32> to vector<2x1x128xf32>
    %68 = vector.shape_cast %67 : vector<2x1x128xf32> to vector<2x128xf32>
    %cst_15 = arith.constant dense<0.000000e+00> : vector<2x128xf32>
    %69 = tpu.matmul %66, %7, %cst_15 {dimension_numbers = #tpu.dot_dimension_numbers<[1], [0], [0], [1], [0, 0, 1, 1], [], []>} : vector<2x32xf32>, vector<32x128xf32>, vector<2x128xf32> -> vector<2x128xf32>
    %70 = arith.addf %68, %69 : vector<2x128xf32>
    %71 = arith.negf %70 : vector<2x128xf32>
    %72 = math.exp %71 : vector<2x128xf32>
    %cst_16 = arith.constant 1.000000e+00 : f32
    %73 = vector.broadcast %cst_16 : f32 to vector<2x128xf32>
    %74 = arith.addf %73, %72 : vector<2x128xf32>
    %75 = arith.divf %73, %74 : vector<2x128xf32>
    %76 = vector.extract_strided_slice %70 {offsets = [0, 64], sizes = [2, 32], strides = [1, 1]} : vector<2x128xf32> to vector<2x32xf32>
    %77 = math.tanh %76 : vector<2x32xf32>
    %78 = vector.extract_strided_slice %75 {offsets = [0, 0], sizes = [2, 32], strides = [1, 1]} : vector<2x128xf32> to vector<2x32xf32>
    %79 = vector.extract_strided_slice %75 {offsets = [0, 32], sizes = [2, 32], strides = [1, 1]} : vector<2x128xf32> to vector<2x32xf32>
    %80 = vector.extract_strided_slice %75 {offsets = [0, 96], sizes = [2, 32], strides = [1, 1]} : vector<2x128xf32> to vector<2x32xf32>
    %81 = arith.mulf %79, %64 : vector<2x32xf32>
    %82 = arith.mulf %78, %77 : vector<2x32xf32>
    %83 = arith.addf %81, %82 : vector<2x32xf32>
    %84 = math.tanh %83 : vector<2x32xf32>
    %85 = arith.mulf %80, %84 : vector<2x32xf32>
    %86 = vector.extract_strided_slice %6 {offsets = [0, 4, 0], sizes = [2, 1, 128], strides = [1, 1, 1]} : vector<2x8x128xf32> to vector<2x1x128xf32>
    %87 = vector.shape_cast %86 : vector<2x1x128xf32> to vector<2x128xf32>
    %cst_17 = arith.constant dense<0.000000e+00> : vector<2x128xf32>
    %88 = tpu.matmul %85, %7, %cst_17 {dimension_numbers = #tpu.dot_dimension_numbers<[1], [0], [0], [1], [0, 0, 1, 1], [], []>} : vector<2x32xf32>, vector<32x128xf32>, vector<2x128xf32> -> vector<2x128xf32>
    %89 = arith.addf %87, %88 : vector<2x128xf32>
    %90 = arith.negf %89 : vector<2x128xf32>
    %91 = math.exp %90 : vector<2x128xf32>
    %cst_18 = arith.constant 1.000000e+00 : f32
    %92 = vector.broadcast %cst_18 : f32 to vector<2x128xf32>
    %93 = arith.addf %92, %91 : vector<2x128xf32>
    %94 = arith.divf %92, %93 : vector<2x128xf32>
    %95 = vector.extract_strided_slice %89 {offsets = [0, 64], sizes = [2, 32], strides = [1, 1]} : vector<2x128xf32> to vector<2x32xf32>
    %96 = math.tanh %95 : vector<2x32xf32>
    %97 = vector.extract_strided_slice %94 {offsets = [0, 0], sizes = [2, 32], strides = [1, 1]} : vector<2x128xf32> to vector<2x32xf32>
    %98 = vector.extract_strided_slice %94 {offsets = [0, 32], sizes = [2, 32], strides = [1, 1]} : vector<2x128xf32> to vector<2x32xf32>
    %99 = vector.extract_strided_slice %94 {offsets = [0, 96], sizes = [2, 32], strides = [1, 1]} : vector<2x128xf32> to vector<2x32xf32>
    %100 = arith.mulf %98, %83 : vector<2x32xf32>
    %101 = arith.mulf %97, %96 : vector<2x32xf32>
    %102 = arith.addf %100, %101 : vector<2x32xf32>
    %103 = math.tanh %102 : vector<2x32xf32>
    %104 = arith.mulf %99, %103 : vector<2x32xf32>
    %105 = vector.extract_strided_slice %6 {offsets = [0, 5, 0], sizes = [2, 1, 128], strides = [1, 1, 1]} : vector<2x8x128xf32> to vector<2x1x128xf32>
    %106 = vector.shape_cast %105 : vector<2x1x128xf32> to vector<2x128xf32>
    %cst_19 = arith.constant dense<0.000000e+00> : vector<2x128xf32>
    %107 = tpu.matmul %104, %7, %cst_19 {dimension_numbers = #tpu.dot_dimension_numbers<[1], [0], [0], [1], [0, 0, 1, 1], [], []>} : vector<2x32xf32>, vector<32x128xf32>, vector<2x128xf32> -> vector<2x128xf32>
    %108 = arith.addf %106, %107 : vector<2x128xf32>
    %109 = arith.negf %108 : vector<2x128xf32>
    %110 = math.exp %109 : vector<2x128xf32>
    %cst_20 = arith.constant 1.000000e+00 : f32
    %111 = vector.broadcast %cst_20 : f32 to vector<2x128xf32>
    %112 = arith.addf %111, %110 : vector<2x128xf32>
    %113 = arith.divf %111, %112 : vector<2x128xf32>
    %114 = vector.extract_strided_slice %108 {offsets = [0, 64], sizes = [2, 32], strides = [1, 1]} : vector<2x128xf32> to vector<2x32xf32>
    %115 = math.tanh %114 : vector<2x32xf32>
    %116 = vector.extract_strided_slice %113 {offsets = [0, 0], sizes = [2, 32], strides = [1, 1]} : vector<2x128xf32> to vector<2x32xf32>
    %117 = vector.extract_strided_slice %113 {offsets = [0, 32], sizes = [2, 32], strides = [1, 1]} : vector<2x128xf32> to vector<2x32xf32>
    %118 = vector.extract_strided_slice %113 {offsets = [0, 96], sizes = [2, 32], strides = [1, 1]} : vector<2x128xf32> to vector<2x32xf32>
    %119 = arith.mulf %117, %102 : vector<2x32xf32>
    %120 = arith.mulf %116, %115 : vector<2x32xf32>
    %121 = arith.addf %119, %120 : vector<2x32xf32>
    %122 = math.tanh %121 : vector<2x32xf32>
    %123 = arith.mulf %118, %122 : vector<2x32xf32>
    %124 = vector.extract_strided_slice %6 {offsets = [0, 6, 0], sizes = [2, 1, 128], strides = [1, 1, 1]} : vector<2x8x128xf32> to vector<2x1x128xf32>
    %125 = vector.shape_cast %124 : vector<2x1x128xf32> to vector<2x128xf32>
    %cst_21 = arith.constant dense<0.000000e+00> : vector<2x128xf32>
    %126 = tpu.matmul %123, %7, %cst_21 {dimension_numbers = #tpu.dot_dimension_numbers<[1], [0], [0], [1], [0, 0, 1, 1], [], []>} : vector<2x32xf32>, vector<32x128xf32>, vector<2x128xf32> -> vector<2x128xf32>
    %127 = arith.addf %125, %126 : vector<2x128xf32>
    %128 = arith.negf %127 : vector<2x128xf32>
    %129 = math.exp %128 : vector<2x128xf32>
    %cst_22 = arith.constant 1.000000e+00 : f32
    %130 = vector.broadcast %cst_22 : f32 to vector<2x128xf32>
    %131 = arith.addf %130, %129 : vector<2x128xf32>
    %132 = arith.divf %130, %131 : vector<2x128xf32>
    %133 = vector.extract_strided_slice %127 {offsets = [0, 64], sizes = [2, 32], strides = [1, 1]} : vector<2x128xf32> to vector<2x32xf32>
    %134 = math.tanh %133 : vector<2x32xf32>
    %135 = vector.extract_strided_slice %132 {offsets = [0, 0], sizes = [2, 32], strides = [1, 1]} : vector<2x128xf32> to vector<2x32xf32>
    %136 = vector.extract_strided_slice %132 {offsets = [0, 32], sizes = [2, 32], strides = [1, 1]} : vector<2x128xf32> to vector<2x32xf32>
    %137 = vector.extract_strided_slice %132 {offsets = [0, 96], sizes = [2, 32], strides = [1, 1]} : vector<2x128xf32> to vector<2x32xf32>
    %138 = arith.mulf %136, %121 : vector<2x32xf32>
    %139 = arith.mulf %135, %134 : vector<2x32xf32>
    %140 = arith.addf %138, %139 : vector<2x32xf32>
    %141 = math.tanh %140 : vector<2x32xf32>
    %142 = arith.mulf %137, %141 : vector<2x32xf32>
    %143 = vector.extract_strided_slice %6 {offsets = [0, 7, 0], sizes = [2, 1, 128], strides = [1, 1, 1]} : vector<2x8x128xf32> to vector<2x1x128xf32>
    %144 = vector.shape_cast %143 : vector<2x1x128xf32> to vector<2x128xf32>
    %cst_23 = arith.constant dense<0.000000e+00> : vector<2x128xf32>
    %145 = tpu.matmul %142, %7, %cst_23 {dimension_numbers = #tpu.dot_dimension_numbers<[1], [0], [0], [1], [0, 0, 1, 1], [], []>} : vector<2x32xf32>, vector<32x128xf32>, vector<2x128xf32> -> vector<2x128xf32>
    %146 = arith.addf %144, %145 : vector<2x128xf32>
    %147 = arith.negf %146 : vector<2x128xf32>
    %148 = math.exp %147 : vector<2x128xf32>
    %cst_24 = arith.constant 1.000000e+00 : f32
    %149 = vector.broadcast %cst_24 : f32 to vector<2x128xf32>
    %150 = arith.addf %149, %148 : vector<2x128xf32>
    %151 = arith.divf %149, %150 : vector<2x128xf32>
    %152 = vector.extract_strided_slice %146 {offsets = [0, 64], sizes = [2, 32], strides = [1, 1]} : vector<2x128xf32> to vector<2x32xf32>
    %153 = math.tanh %152 : vector<2x32xf32>
    %154 = vector.extract_strided_slice %151 {offsets = [0, 0], sizes = [2, 32], strides = [1, 1]} : vector<2x128xf32> to vector<2x32xf32>
    %155 = vector.extract_strided_slice %151 {offsets = [0, 32], sizes = [2, 32], strides = [1, 1]} : vector<2x128xf32> to vector<2x32xf32>
    %156 = vector.extract_strided_slice %151 {offsets = [0, 96], sizes = [2, 32], strides = [1, 1]} : vector<2x128xf32> to vector<2x32xf32>
    %157 = arith.mulf %155, %140 : vector<2x32xf32>
    %158 = arith.mulf %154, %153 : vector<2x32xf32>
    %159 = arith.addf %157, %158 : vector<2x32xf32>
    %160 = math.tanh %159 : vector<2x32xf32>
    %161 = arith.mulf %156, %160 : vector<2x32xf32>
    %162 = vector.shape_cast %28 : vector<2x32xf32> to vector<2x1x32xf32>
    %163 = vector.shape_cast %47 : vector<2x32xf32> to vector<2x1x32xf32>
    %164 = vector.shape_cast %66 : vector<2x32xf32> to vector<2x1x32xf32>
    %165 = vector.shape_cast %85 : vector<2x32xf32> to vector<2x1x32xf32>
    %166 = vector.shape_cast %104 : vector<2x32xf32> to vector<2x1x32xf32>
    %167 = vector.shape_cast %123 : vector<2x32xf32> to vector<2x1x32xf32>
    %168 = vector.shape_cast %142 : vector<2x32xf32> to vector<2x1x32xf32>
    %169 = vector.shape_cast %161 : vector<2x32xf32> to vector<2x1x32xf32>
    %170 = tpu.concatenate %162, %163, %164, %165, %166, %167, %168, %169 in 1 : vector<2x1x32xf32>, vector<2x1x32xf32>, vector<2x1x32xf32>, vector<2x1x32xf32>, vector<2x1x32xf32>, vector<2x1x32xf32>, vector<2x1x32xf32>, vector<2x1x32xf32> -> vector<2x8x32xf32>
    %171 = vector.shape_cast %170 : vector<2x8x32xf32> to vector<16x32xf32>
    %c0_25 = arith.constant 0 : index
    %c0_26 = arith.constant 0 : index
    %172 = vector.load %arg5[%c0_25, %c0_26] : memref<32x8xf32, #tpu.memory_space<vmem>>, vector<32x8xf32>
    %cst_27 = arith.constant dense<0.000000e+00> : vector<16x8xf32>
    %173 = tpu.matmul %171, %172, %cst_27 {dimension_numbers = #tpu.dot_dimension_numbers<[1], [0], [0], [1], [0, 0, 1, 1], [], []>} : vector<16x32xf32>, vector<32x8xf32>, vector<16x8xf32> -> vector<16x8xf32>
    %c0_28 = arith.constant 0 : index
    %c0_29 = arith.constant 0 : index
    %174 = vector.load %arg6[%c0_28, %c0_29] : memref<1x8xf32, #tpu.memory_space<vmem>>, vector<1x8xf32>
    %175 = vector.broadcast %174 : vector<1x8xf32> to vector<16x8xf32>
    %176 = arith.addf %173, %175 : vector<16x8xf32>
    %c0_30 = arith.constant 0 : index
    %c0_31 = arith.constant 0 : index
    %177 = vector.load %arg7[%c0_30, %c0_31] : memref<16x8xf32, #tpu.memory_space<vmem>>, vector<16x8xf32>
    tpu.vector_store %arg7[%c0_30, %c0_31], %176 {strides = array<i32>} : memref<16x8xf32, #tpu.memory_space<vmem>>, vector<16x8xf32>,
    %178 = tpu.concatenate %161, %159 in 1 : vector<2x32xf32>, vector<2x32xf32> -> vector<2x64xf32>
    %c0_32 = arith.constant 0 : index
    %c0_33 = arith.constant 0 : index
    %179 = vector.load %arg8[%c0_32, %c0_33] : memref<2x64xf32, #tpu.memory_space<vmem>>, vector<2x64xf32>
    tpu.vector_store %arg8[%c0_32, %c0_33], %178 {strides = array<i32>} : memref<2x64xf32, #tpu.memory_space<vmem>>, vector<2x64xf32>,
    return
  }
  func.func @transform_0(%arg0: i32) -> (i32, i32) {
    %c0_i32 = arith.constant 0 : i32
    %c0_i32_0 = arith.constant 0 : i32
    %c0_i32_1 = arith.constant 0 : i32
    return %c0_i32, %c0_i32_0 : i32, i32
  }
  func.func @transform_1(%arg0: i32) -> (i32, i32) {
    %c0_i32 = arith.constant 0 : i32
    %c0_i32_0 = arith.constant 0 : i32
    %c0_i32_1 = arith.constant 0 : i32
    return %c0_i32, %c0_i32_0 : i32, i32
  }
  func.func @transform_2(%arg0: i32) -> (i32, i32) {
    %c0_i32 = arith.constant 0 : i32
    %c0_i32_0 = arith.constant 0 : i32
    %c0_i32_1 = arith.constant 0 : i32
    return %c0_i32, %c0_i32_0 : i32, i32
  }
  func.func @transform_3(%arg0: i32) -> (i32, i32) {
    %c0_i32 = arith.constant 0 : i32
    %c0_i32_0 = arith.constant 0 : i32
    %c0_i32_1 = arith.constant 0 : i32
    return %c0_i32, %c0_i32_0 : i32, i32
  }
  func.func @transform_4(%arg0: i32) -> (i32, i32) {
    %c0_i32 = arith.constant 0 : i32
    %c0_i32_0 = arith.constant 0 : i32
    %c0_i32_1 = arith.constant 0 : i32
    return %c0_i32, %c0_i32_0 : i32, i32
  }
  func.func @transform_5(%arg0: i32) -> (i32, i32) {
    %c0_i32 = arith.constant 0 : i32
    %c0_i32_0 = arith.constant 0 : i32
    %c0_i32_1 = arith.constant 0 : i32
    return %c0_i32, %c0_i32_0 : i32, i32
  }
  func.func @transform_6(%arg0: i32) -> (i32, i32) {
    %c0_i32 = arith.constant 0 : i32
    %c0_i32_0 = arith.constant 0 : i32
    %c0_i32_1 = arith.constant 0 : i32
    return %c0_i32, %c0_i32_0 : i32, i32
  }
  func.func @transform_7(%arg0: i32) -> (i32, i32) {
    %c0_i32 = arith.constant 0 : i32
    %c0_i32_0 = arith.constant 0 : i32
    %c0_i32_1 = arith.constant 0 : i32
    return %c0_i32, %c0_i32_0 : i32, i32
  }
}

</mosaic_0001>

<bundles_post_ra>
// kernel: prednet_forward.1
= control target key start
LH: loop header
LB: loop body
LE: loop exit
PB: predicated region body
PF: predicated region fallthrough
CT: control target
= control target key end

     0   :  { %13 = vsyncpa [#allocation3], 0  ;;  %s1709_s0 = inlined_call_operand.hbm [shape: f32[16,16], index: 0, kind: input, shape index: {}]   ;;  %s1710_s1 = inlined_call_operand.hbm [shape: f32[16,128], index: 1, kind: input, shape index: {}]   ;;  %s1711_s2 = inlined_call_operand.vmem [shape: f32[32,128], index: 2, kind: input, shape index: {}]   ;;  %s1712_s3 = inlined_call_operand.vmem [shape: f32[1,128], index: 3, kind: input, shape index: {}]   ;;  %s1713_s4 = inlined_call_operand.vmem [shape: f32[32,8], index: 4, kind: input, shape index: {}]   ;;  %s1714_s5 = inlined_call_operand.vmem [shape: f32[1,8], index: 5, kind: input, shape index: {}]   ;;  %s1715_s6 = inlined_call_operand.hbm [shape: f32[16,8], index: 6, kind: output, shape index: {0}]   ;;  %s1716_s7 = inlined_call_operand.vmem [shape: f32[2,64], index: 7, kind: output, shape index: {1}]  }
   0x1   :  { %14 = vsyncpa [#allocation6], 0 }
   0x2   :  { %15 = vsyncpa [#allocation4], 0  ;;  %s20_s26 = sshll.u32 %s1709_s0, 4  ;;  %s1366_s27 = smov [#allocation2]   ;;  %s21_s26 = int_to_ptr.hbm [resolvable:$true] %s20_s26 }
   0x3   :  { %s22_s28 = sshll.u32 %s1366_s27, 4  ;;  %s33_s8 = sshll.u32 %s1710_s1, 4  ;;  %s23_s28 = int_to_ptr.vmem [resolvable:$true] %s22_s28  ;;  %s34_s8 = int_to_ptr.hbm [resolvable:$true] %s33_s8 }
   0x4   :  { %s1367_s9 = smov 128   ;;  %s1368_s10 = smov 8  }
   0x5   :  { %28 = dma.hbm_to_vmem [thread:$0]  %s21_s26, 256, %s23_s28, [#allocation3], %s1367_s9, %s1367_s9, %s1368_s10  }
   0x6   :  { %s1369_s11 = smov [#allocation5]  }
   0x7   :  { %s35_s12 = sshll.u32 %s1369_s11, 4  ;;  %s36_s12 = int_to_ptr.vmem [resolvable:$true] %s35_s12 }
   0x8   :  { %41 = dma.hbm_to_vmem [thread:$0]  %s34_s8, 256, %s36_s12, [#allocation6], %s1367_s9, %s1367_s9, %s1368_s10  }
   0x9   :  { %1360 = dma.done.wait [#allocation3], 256  }
   0xa   :  { %1361 = vsyncadd [#allocation3], 4294967040 }
   0xb   :  { %1362 = dma.done.wait [#allocation6], 256  }
   0xc   :  { %1363 = vsyncadd [#allocation6], 4294967040  ;;  %v61_v0 = vld [vmem:[#allocation5 + $0x8] sm:$0xff]  ;;  %v60_v2 = vld [vmem:[#allocation5] sm:$0xff]  ;;  %vm66_vm0 = vcmask 130048   ;;  %v1370_v7 = vmov 0.0  }
   0xd   :  { %v1429_v1 = vld [vmem:[%s1711_s2 + $0x18] sm:$0xff]  ;;  %87 = vmatpush.msra.mxu0 %v61_v0  ;;  %v1435_v3 = vld [vmem:[%s1711_s2 + $0x10] sm:$0xff]  ;;  %v58_v4 = vld [vmem:[#allocation2] sm:$0xff]  ;;  %s1371_s20 = smov 64   ;;  %vm207_vm9 = vcmask 1041409   ;;  %vm100_vm10 = vcmask 261120  }
   0xe   :  { %116 = vmatpush.msra.mxu1 %v1429_v1  ;;  %v1440_v5 = vld [vmem:[%s1711_s2 + $0x8] sm:$0xff]  ;;  %225 = vmatpush.msra.mxu3 %v1429_v1  ;;  %v1449_v6 = vld [vmem:[%s1711_s2] sm:$0xff]  ;;  %s1373_s0 = smov [#allocation7]   ;;  %s1105_s15 = sshll.u32 %s1715_s6, 4  ;;  %s1106_s15 = int_to_ptr.hbm [resolvable:$true] %s1105_s15 }
   0xf   :  { %571 = vmatpush.msra.mxu2 %v1429_v1  ;;  %88 = vmatpush.msra.mxu0 %v60_v2  ;;  %v59_v8 = vld [vmem:[#allocation2 + $0x8] sm:$0xff]  ;;  %v1158_v11 = vld [vmem:[%s1712_s3] ss:$0 sm:$0xff]  ;;  %s1372_s3 = smov 32   ;;  %s1103_s1 = sshll.u32 %s1373_s0, 4  ;;  %s1104_s1 = int_to_ptr.vmem [resolvable:$true] %s1103_s1 }
  0x10   :  { %117 = vmatpush.msra.mxu1 %v1435_v3  ;;  %1123 = vmatmul.msk.f32.vlgmr.msra.gmra.mxu0 %vm66_vm0, %v58_v4 }
  0x11   :  { %226 = vmatpush.msra.mxu3 %v1435_v3  ;;  %572 = vmatpush.msra.mxu2 %v1435_v3 }
  0x12   :  { %118 = vmatpush.msra.mxu1 %v1440_v5  ;;  %803 = vmatpush.msrb.mxu0 %v1429_v1 }
  0x13   :  { %227 = vmatpush.msra.mxu3 %v1440_v5  ;;  %573 = vmatpush.msra.mxu2 %v1440_v5 }
  0x14   :  { %119 = vmatpush.msra.mxu1 %v1449_v6  ;;  %804 = vmatpush.msrb.mxu0 %v1435_v3 }
  0x15   :  { %120 = vmatmul.f32.vlgmr.msra.gmra.mxu1 %v1370_v7  ;;  %228 = vmatpush.msra.mxu3 %v1449_v6 }
  0x16   :  { %455 = vmatpush.msrb.mxu1 %v1429_v1  ;;  %574 = vmatpush.msra.mxu2 %v1449_v6 }
  0x17   :  { %339 = vmatpush.msrb.mxu3 %v1429_v1  ;;  %805 = vmatpush.msrb.mxu0 %v1440_v5 }
  0x18   :  { %456 = vmatpush.msrb.mxu1 %v1435_v3  ;;  %1124 = vmatmul.msk.f32.gmra.mxu0 %vm66_vm0, %v59_v8 }
  0x19   :  { %340 = vmatpush.msrb.mxu3 %v1435_v3  ;;  %806 = vmatpush.msrb.mxu0 %v1449_v6 }
  0x1a   :  { %457 = vmatpush.msrb.mxu1 %v1440_v5 }
  0x1b   :  { %341 = vmatpush.msrb.mxu3 %v1440_v5 }
  0x1c   :  { %458 = vmatpush.msrb.mxu1 %v1449_v6 }
  0x1d   :  { %342 = vmatpush.msrb.mxu3 %v1449_v6 }
  0x1e   :  { %919 = vmatpush.msra.mxu1 %v1429_v1 }
  0x20   :  { %920 = vmatpush.msra.mxu1 %v1435_v3 }
  0x22   :  { %921 = vmatpush.msra.mxu1 %v1440_v5 }
  0x24   :  { %922 = vmatpush.msra.mxu1 %v1449_v6 }
  0x8d   :  { %v90_v9 = vpop.f32.mrf.mxu0 }
  0x8e   :  { %v1482_v16 = vadd.f32 %v1158_v11, %v90_v9 }
  0x92   :  { %v121_v10 = vpop.f32.mrf.mxu1 }
  0x93   :  { %v125_v12 = vrot.slane %v121_v10, 1  ;;  %v128_v17 = vadd.f32 %v121_v10, %v1482_v16 }
  0x95   :  { %v93_v13 = vpop.f32.mrf.mxu0  ;;  %v1125_v21 = vmul.f32 -1.442695, %v128_v17 }
  0x96   :  { %v1479_v14 = vadd.f32 %v1158_v11, %v93_v13 }
  0x98   :  { %v129_v15 = vadd.f32 %v125_v12, %v1479_v14 }
  0x9a   :  { %1160 = vtanh.f32 %v129_v15  ;;  %v1126_v20 = vmul.f32 -1.442695, %v129_v15 }
  0x9b   :  { %1162 = vtanh.f32 %v128_v17 }
  0x9c   :  { %1164 = vpow2.f32 %v1126_v20 }
  0x9d   :  { %1166 = vpow2.f32 %v1125_v21 }
  0xa0   :  { %v1161_v18 = vpop.eup %1160 }
  0xa1   :  { %176 = vrot.lane.b32.xlu0 %v1161_v18, %s1371_s20  ;;  %v1163_v19 = vpop.eup %1162 }
  0xa2   :  { %v1165_v22 = vpop.eup %1164 }
  0xa3   :  { %v137_v23 = vadd.f32 1.0, %v1165_v22  ;;  %v1167_v24 = vpop.eup %1166 }
  0xa4   :  { %v136_v25 = vadd.f32 1.0, %v1167_v24 }
  0xa5   :  { %1168 = vrcp.f32 %v137_v23  ;;  %v164_v34 = vand.u32 2147483648, %v137_v23  ;;  %vm158_vm2 = vweird.f32 %v137_v23  ;;  %v162_v35 = vand.u32 2147483647, %v137_v23 }
  0xa6   :  { %1170 = vrcp.f32 %v136_v25  ;;  %v149_v43 = vand.u32 2147483648, %v136_v25  ;;  %vm143_vm6 = vweird.f32 %v136_v25  ;;  %v147_v44 = vand.u32 2147483647, %v136_v25 }
  0xa7   :  { %v165_v38 = vor.u32 1.1754944e-38, %v164_v34  ;;  %vm163_vm4 = vcmp.eq.f32.partialorder %v162_v35, 8.507059e+37 }
  0xa8   :  { %v150_v46 = vor.u32 1.1754944e-38, %v149_v43  ;;  %vm148_vm8 = vcmp.eq.f32.partialorder %v147_v44, 8.507059e+37 }
  0xa9   :  { %174 = vrot.lane.b32.xlu0 %v1163_v19, %s1371_s20 }
  0xab   :  { %v1169_v26 = vpop.eup %1168 }
  0xac   :  { %v154_v27 = vmul.f32 %v1169_v26, %v137_v23  ;;  %v1171_v29 = vpop.eup %1170  ;;  %vm159_vm1 = vweird.f32 %v1169_v26 }
  0xad   :  { %v139_v31 = vmul.f32 %v1171_v29, %v136_v25  ;;  %vm160_vm3 = vmor %vm158_vm2, %vm159_vm1  ;;  %vm144_vm5 = vweird.f32 %v1171_v29 }
  0xae   :  { %v155_v28 = vsub.f32 1.0, %v154_v27  ;;  %vm145_vm7 = vmor %vm143_vm6, %vm144_vm5 }
  0xaf   :  { %v140_v33 = vsub.f32 1.0, %v139_v31 }
  0xb0   :  { %v156_v30 = vmul.f32 %v1169_v26, %v155_v28 }
  0xb1   :  { %v141_v37 = vmul.f32 %v1171_v29, %v140_v33 }
  0xb2   :  { %v157_v32 = vadd.f32 %v1169_v26, %v156_v30 }
  0xb3   :  { %v142_v42 = vadd.f32 %v1171_v29, %v141_v37 }
  0xb4   :  { %v161_v36 = vsel %vm160_vm3, %v1169_v26, %v157_v32 }
  0xb5   :  { %v166_v40 = vsel %vm163_vm4, %v165_v38, %v161_v36  ;;  %v146_v45 = vsel %vm145_vm7, %v1171_v29, %v142_v42 }
  0xb6   :  { %v151_v48 = vsel %vm148_vm8, %v150_v46, %v146_v45  ;;  %v171_v50 = vmul.f32 0.0, %v166_v40 }
  0xb7   :  { %v170_v53 = vmul.f32 0.0, %v151_v48 }
 0x113   :  { %v177_v39 = vpop.permute.xlu0 %176 }
 0x114   :  { %v181_v41 = vmul.f32 %v177_v39, %v166_v40 }
 0x116   :  { %186 = vrot.lane.b32.xlu1 %v181_v41, %s1372_s3 }
 0x11b   :  { %v175_v47 = vpop.permute.xlu0 %174 }
 0x11c   :  { %v180_v49 = vmul.f32 %v175_v47, %v151_v48 }
 0x11e   :  { %184 = vrot.lane.b32.xlu1 %v180_v49, %s1372_s3 }
 0x188   :  { %v187_v51 = vpop.permute.xlu1 %186 }
 0x189   :  { %v1489_v52 = vadd.f32 %v187_v51, %v171_v50 }
 0x18b   :  { %1172 = vtanh.f32 %v1489_v52  ;;  %v282_v39 = vrot.slane %v1489_v52, 7 }
 0x190   :  { %v185_v54 = vpop.permute.xlu1 %184 }
 0x191   :  { %v1173_v55 = vpop.eup %1172  ;;  %v1492_v56 = vadd.f32 %v185_v54, %v170_v53 }
 0x192   :  { %198 = vrot.lane.b32.xlu2 %v1173_v55, %s1371_s20 }
 0x193   :  { %1174 = vtanh.f32 %v1492_v56  ;;  %v281_v44 = vrot.slane %v1492_v56, 7 }
 0x199   :  { %v1175_v57 = vpop.eup %1174 }
 0x19a   :  { %196 = vrot.lane.b32.xlu2 %v1175_v57, %s1371_s20 }
 0x1ec   :  { %v199_v58 = vpop.permute.xlu2 %198 }
 0x1ed   :  { %v1497_v59 = vmul.f32 %v199_v58, %v166_v40 }
 0x1ef   :  { %v206_v61 = vrot.slane %v1497_v59, 7 }
 0x1f4   :  { %v197_v60 = vpop.permute.xlu2 %196 }
 0x1f5   :  { %v1500_v62 = vmul.f32 %v197_v60, %v151_v48 }
 0x1f7   :  { %v208_v63 = vsel %vm207_vm9, %v206_v61, %v1500_v62 }
 0x1f8   :  { %209 = vrot.lane.b32.xlu0 %v208_v63, %s1372_s3 }
 0x26a   :  { %v210_v0 = vpop.permute.xlu0 %209 }
 0x26b   :  { %1127 = vmatmul.msk.f32.vlgmr.msra.gmra.mxu3 %vm100_vm10, %v210_v0 }
 0x26c   :  { %687 = vmatpush.msra.mxu3 %v1429_v1 }
 0x26e   :  { %688 = vmatpush.msra.mxu3 %v1435_v3 }
 0x270   :  { %689 = vmatpush.msra.mxu3 %v1440_v5 }
 0x272   :  { %690 = vmatpush.msra.mxu3 %v1449_v6 }
 0x2ee   :  { %v230_v2 = vpop.f32.mrf.mxu3 }
 0x2ef   :  { %v234_v4 = vrot.slane %v230_v2, 7  ;;  %v238_v7 = vadd.f32 %v230_v2, %v1479_v14 }
 0x2f1   :  { %v237_v8 = vadd.f32 %v234_v4, %v1482_v16  ;;  %1176 = vtanh.f32 %v238_v7  ;;  %v1129_v1 = vmul.f32 -1.442695, %v238_v7 }
 0x2f3   :  { %1178 = vtanh.f32 %v237_v8  ;;  %v1128_v12 = vmul.f32 -1.442695, %v237_v8 }
 0x2f4   :  { %1180 = vpow2.f32 %v1129_v1 }
 0x2f7   :  { %v1177_v9 = vpop.eup %1176 }
 0x2f8   :  { %291 = vrot.lane.b32.xlu2 %v1177_v9, %s1371_s20 }
 0x2f9   :  { %v1179_v10 = vpop.eup %1178 }
 0x2fa   :  { %289 = vrot.lane.b32.xlu1 %v1179_v10, %s1371_s20  ;;  %v1181_v3 = vpop.eup %1180 }
 0x2fb   :  { %v246_v5 = vadd.f32 1.0, %v1181_v3 }
 0x2fd   :  { %1182 = vrcp.f32 %v246_v5  ;;  %v273_v19 = vand.u32 2147483648, %v246_v5  ;;  %vm267_vm12 = vweird.f32 %v246_v5  ;;  %v271_v21 = vand.u32 2147483647, %v246_v5 }
 0x2fe   :  { %1184 = vpow2.f32 %v1128_v12 }
 0x2ff   :  { %v274_v23 = vor.u32 1.1754944e-38, %v273_v19  ;;  %vm272_vm14 = vcmp.eq.f32.partialorder %v271_v21, 8.507059e+37 }
 0x303   :  { %v1183_v6 = vpop.eup %1182 }
 0x304   :  { %v263_v11 = vmul.f32 %v1183_v6, %v246_v5  ;;  %v1185_v17 = vpop.eup %1184  ;;  %vm268_vm11 = vweird.f32 %v1183_v6 }
 0x305   :  { %v245_v20 = vadd.f32 1.0, %v1185_v17  ;;  %vm269_vm13 = vmor %vm267_vm12, %vm268_vm11 }
 0x306   :  { %v264_v13 = vsub.f32 1.0, %v263_v11 }
 0x307   :  { %1186 = vrcp.f32 %v245_v20  ;;  %v258_v32 = vand.u32 2147483648, %v245_v20  ;;  %vm252_vm0 = vweird.f32 %v245_v20  ;;  %v256_v33 = vand.u32 2147483647, %v245_v20 }
 0x308   :  { %v265_v15 = vmul.f32 %v1183_v6, %v264_v13 }
 0x309   :  { %v259_v35 = vor.u32 1.1754944e-38, %v258_v32  ;;  %vm257_vm2 = vcmp.eq.f32.partialorder %v256_v33, 8.507059e+37 }
 0x30a   :  { %v266_v18 = vadd.f32 %v1183_v6, %v265_v15 }
 0x30c   :  { %v270_v22 = vsel %vm269_vm13, %v1183_v6, %v266_v18  ;;  %vm1014_vm13 = vcmask 1040384  }
 0x30d   :  { %v275_v25 = vsel %vm272_vm14, %v274_v23, %v270_v22  ;;  %v1187_v27 = vpop.eup %1186  ;;  %vm1017_vm14 = vcmask 1041408  }
 0x30e   :  { %v248_v28 = vmul.f32 %v1187_v27, %v245_v20  ;;  %vm253_vm15 = vweird.f32 %v1187_v27  ;;  %v286_v40 = vmul.f32 %v282_v39, %v275_v25 }
 0x30f   :  { %vm254_vm1 = vmor %vm252_vm0, %vm253_vm15 }
 0x310   :  { %v249_v29 = vsub.f32 1.0, %v248_v28 }
 0x312   :  { %v250_v30 = vmul.f32 %v1187_v27, %v249_v29 }
 0x314   :  { %v251_v31 = vadd.f32 %v1187_v27, %v250_v30 }
 0x316   :  { %v255_v34 = vsel %vm254_vm1, %v1187_v27, %v251_v31 }
 0x317   :  { %v260_v37 = vsel %vm257_vm2, %v259_v35, %v255_v34 }
 0x318   :  { %v285_v45 = vmul.f32 %v281_v44, %v260_v37 }
 0x352   :  { %v292_v24 = vpop.permute.xlu2 %291 }
 0x353   :  { %v296_v26 = vmul.f32 %v292_v24, %v275_v25 }
 0x355   :  { %301 = vrot.lane.b32.xlu1 %v296_v26, %s1372_s3 }
 0x36c   :  { %v290_v36 = vpop.permute.xlu1 %289 }
 0x36d   :  { %v295_v38 = vmul.f32 %v290_v36, %v260_v37 }
 0x36f   :  { %299 = vrot.lane.b32.xlu0 %v295_v38, %s1372_s3 }
 0x3c7   :  { %v302_v41 = vpop.permute.xlu1 %301 }
 0x3c8   :  { %v1517_v42 = vadd.f32 %v302_v41, %v286_v40 }
 0x3ca   :  { %1188 = vtanh.f32 %v1517_v42  ;;  %v397_v34 = vrot.slane %v1517_v42, 7 }
 0x3d0   :  { %v1189_v43 = vpop.eup %1188 }
 0x3d1   :  { %313 = vrot.lane.b32.xlu0 %v1189_v43, %s1371_s20 }
 0x3e1   :  { %v300_v46 = vpop.permute.xlu0 %299 }
 0x3e2   :  { %v1522_v47 = vadd.f32 %v300_v46, %v285_v45 }
 0x3e4   :  { %1190 = vtanh.f32 %v1522_v47  ;;  %v396_v33 = vrot.slane %v1522_v47, 7 }
 0x3ea   :  { %v1191_v48 = vpop.eup %1190 }
 0x3eb   :  { %311 = vrot.lane.b32.xlu2 %v1191_v48, %s1371_s20 }
 0x443   :  { %v314_v49 = vpop.permute.xlu0 %313 }
 0x444   :  { %v1528_v52 = vmul.f32 %v314_v49, %v275_v25 }
 0x445   :  { %v312_v50 = vpop.permute.xlu2 %311 }
 0x446   :  { %v1526_v51 = vmul.f32 %v312_v50, %v260_v37  ;;  %v1016_v48 = vsel %vm1014_vm13, %v1497_v59, %v1528_v52 }
 0x448   :  { %v321_v53 = vrot.slane %v1526_v51, 1  ;;  %v1015_v46 = vsel %vm1014_vm13, %v1500_v62, %v1526_v51 }
 0x44a   :  { %v322_v54 = vsel %vm207_vm9, %v1528_v52, %v321_v53 }
 0x44b   :  { %323 = vrot.lane.b32.xlu1 %v322_v54, %s1372_s3 }
 0x4bd   :  { %v324_v55 = vpop.permute.xlu1 %323 }
 0x4be   :  { %1130 = vmatmul.msk.f32.vlgmr.msrb.gmra.mxu3 %vm100_vm10, %v324_v55 }
 0x541   :  { %v344_v56 = vpop.f32.mrf.mxu3 }
 0x542   :  { %v348_v57 = vrot.slane %v344_v56, 6  ;;  %v349_v58 = vrot.slane %v344_v56, 7 }
 0x544   :  { %v352_v60 = vadd.f32 %v348_v57, %v1482_v16  ;;  %v353_v61 = vadd.f32 %v349_v58, %v1479_v14 }
 0x546   :  { %1192 = vtanh.f32 %v352_v60  ;;  %v1131_v2 = vmul.f32 -1.442695, %v352_v60  ;;  %v1132_v9 = vmul.f32 -1.442695, %v353_v61 }
 0x547   :  { %1194 = vtanh.f32 %v353_v61 }
 0x548   :  { %1196 = vpow2.f32 %v1131_v2 }
 0x54c   :  { %v1193_v63 = vpop.eup %1192 }
 0x54d   :  { %v1195_v0 = vpop.eup %1194  ;;  %404 = vrot.lane.b32.xlu2 %v1193_v63, %s1371_s20 }
 0x54e   :  { %406 = vrot.lane.b32.xlu0 %v1195_v0, %s1371_s20  ;;  %v1197_v4 = vpop.eup %1196 }
 0x54f   :  { %v360_v7 = vadd.f32 1.0, %v1197_v4 }
 0x551   :  { %1198 = vrcp.f32 %v360_v7  ;;  %v373_v12 = vand.u32 2147483648, %v360_v7  ;;  %vm367_vm4 = vweird.f32 %v360_v7  ;;  %v371_v13 = vand.u32 2147483647, %v360_v7 }
 0x552   :  { %1200 = vpow2.f32 %v1132_v9 }
 0x553   :  { %v374_v17 = vor.u32 1.1754944e-38, %v373_v12  ;;  %vm372_vm6 = vcmp.eq.f32.partialorder %v371_v13, 8.507059e+37 }
 0x557   :  { %v1199_v8 = vpop.eup %1198 }
 0x558   :  { %v363_v10 = vmul.f32 %v1199_v8, %v360_v7  ;;  %v1201_v5 = vpop.eup %1200  ;;  %vm368_vm3 = vweird.f32 %v1199_v8 }
 0x559   :  { %v361_v6 = vadd.f32 1.0, %v1201_v5  ;;  %vm369_vm5 = vmor %vm367_vm4, %vm368_vm3 }
 0x55a   :  { %v364_v1 = vsub.f32 1.0, %v363_v10 }
 0x55b   :  { %1202 = vrcp.f32 %v361_v6  ;;  %v388_v26 = vand.u32 2147483648, %v361_v6  ;;  %vm382_vm8 = vweird.f32 %v361_v6  ;;  %v386_v27 = vand.u32 2147483647, %v361_v6 }
 0x55c   :  { %v365_v3 = vmul.f32 %v1199_v8, %v364_v1 }
 0x55d   :  { %v389_v29 = vor.u32 1.1754944e-38, %v388_v26  ;;  %vm387_vm12 = vcmp.eq.f32.partialorder %v386_v27, 8.507059e+37 }
 0x55e   :  { %v366_v11 = vadd.f32 %v1199_v8, %v365_v3 }
 0x560   :  { %v370_v15 = vsel %vm369_vm5, %v1199_v8, %v366_v11 }
 0x561   :  { %v375_v19 = vsel %vm372_vm6, %v374_v17, %v370_v15  ;;  %v1203_v21 = vpop.eup %1202 }
 0x562   :  { %v378_v22 = vmul.f32 %v1203_v21, %v361_v6  ;;  %vm383_vm7 = vweird.f32 %v1203_v21  ;;  %v400_v35 = vmul.f32 %v396_v33, %v375_v19 }
 0x563   :  { %vm384_vm11 = vmor %vm382_vm8, %vm383_vm7  ;;  %vm1020_vm7 = vcmask 1042432  }
 0x564   :  { %v379_v23 = vsub.f32 1.0, %v378_v22 }
 0x566   :  { %v380_v24 = vmul.f32 %v1203_v21, %v379_v23 }
 0x568   :  { %v381_v25 = vadd.f32 %v1203_v21, %v380_v24 }
 0x56a   :  { %v385_v28 = vsel %vm384_vm11, %v1203_v21, %v381_v25 }
 0x56b   :  { %v390_v31 = vsel %vm387_vm12, %v389_v29, %v385_v28 }
 0x56c   :  { %v401_v36 = vmul.f32 %v397_v34, %v390_v31 }
 0x5a7   :  { %v405_v18 = vpop.permute.xlu2 %404 }
 0x5a8   :  { %v410_v20 = vmul.f32 %v405_v18, %v375_v19 }
 0x5aa   :  { %414 = vrot.lane.b32.xlu1 %v410_v20, %s1372_s3 }
 0x5c0   :  { %v407_v30 = vpop.permute.xlu0 %406 }
 0x5c1   :  { %v411_v32 = vmul.f32 %v407_v30, %v390_v31 }
 0x5c3   :  { %416 = vrot.lane.b32.xlu2 %v411_v32, %s1372_s3 }
 0x61c   :  { %v415_v37 = vpop.permute.xlu1 %414 }
 0x61d   :  { %v417_v38 = vpop.permute.xlu2 %416  ;;  %v1543_v39 = vadd.f32 %v415_v37, %v400_v35 }
 0x61e   :  { %v1545_v40 = vadd.f32 %v417_v38, %v401_v36 }
 0x61f   :  { %1204 = vtanh.f32 %v1543_v39  ;;  %v512_v30 = vrot.slane %v1543_v39, 7 }
 0x620   :  { %1206 = vtanh.f32 %v1545_v40  ;;  %v513_v35 = vrot.slane %v1545_v40, 7 }
 0x625   :  { %v1205_v41 = vpop.eup %1204 }
 0x626   :  { %v1207_v43 = vpop.eup %1206  ;;  %426 = vrot.lane.b32.xlu0 %v1205_v41, %s1371_s20 }
 0x627   :  { %428 = vrot.lane.b32.xlu1 %v1207_v43, %s1371_s20 }
 0x698   :  { %v427_v42 = vpop.permute.xlu0 %426 }
 0x699   :  { %v429_v44 = vpop.permute.xlu1 %428  ;;  %v432_v45 = vmul.f32 %v427_v42, %v375_v19 }
 0x69a   :  { %v433_v47 = vmul.f32 %v429_v44, %v390_v31 }
 0x69b   :  { %v436_v49 = vrot.slane %v432_v45, 2  ;;  %v1555_v50 = vsel %vm1017_vm14, %v1015_v46, %v432_v45 }
 0x69c   :  { %v437_v53 = vrot.slane %v433_v47, 1  ;;  %v1557_v54 = vsel %vm1017_vm14, %v1016_v48, %v433_v47 }
 0x69e   :  { %v438_v55 = vsel %vm207_vm9, %v437_v53, %v436_v49 }
 0x69f   :  { %439 = vrot.lane.b32.xlu2 %v438_v55, %s1372_s3 }
 0x6f9   :  { %v440_v56 = vpop.permute.xlu2 %439 }
 0x6fa   :  { %1133 = vmatmul.msk.f32.vlgmr.msrb.gmra.mxu1 %vm100_vm10, %v440_v56 }
 0x777   :  { %v460_v57 = vpop.f32.mrf.mxu1 }
 0x778   :  { %v464_v58 = vrot.slane %v460_v57, 5  ;;  %v465_v62 = vrot.slane %v460_v57, 6 }
 0x77a   :  { %v468_v51 = vadd.f32 %v464_v58, %v1482_v16  ;;  %v469_v59 = vadd.f32 %v465_v62, %v1479_v14 }
 0x77c   :  { %1208 = vtanh.f32 %v468_v51  ;;  %v1134_v61 = vmul.f32 -1.442695, %v468_v51  ;;  %v1135_v63 = vmul.f32 -1.442695, %v469_v59 }
 0x77d   :  { %1210 = vtanh.f32 %v469_v59 }
 0x77e   :  { %1212 = vpow2.f32 %v1134_v61 }
 0x77f   :  { %1214 = vpow2.f32 %v1135_v63 }
 0x782   :  { %v1209_v52 = vpop.eup %1208 }
 0x783   :  { %v1211_v60 = vpop.eup %1210  ;;  %520 = vrot.lane.b32.xlu0 %v1209_v52, %s1371_s20 }
 0x784   :  { %522 = vrot.lane.b32.xlu1 %v1211_v60, %s1371_s20  ;;  %v1213_v0 = vpop.eup %1212 }
 0x785   :  { %v1215_v2 = vpop.eup %1214  ;;  %v476_v4 = vadd.f32 1.0, %v1213_v0 }
 0x786   :  { %v477_v7 = vadd.f32 1.0, %v1215_v2 }
 0x787   :  { %1216 = vrcp.f32 %v476_v4  ;;  %v489_v15 = vand.u32 2147483648, %v476_v4  ;;  %vm483_vm1 = vweird.f32 %v476_v4  ;;  %v487_v18 = vand.u32 2147483647, %v476_v4 }
 0x788   :  { %1218 = vrcp.f32 %v477_v7  ;;  %v504_v17 = vand.u32 2147483648, %v477_v7  ;;  %vm498_vm2 = vweird.f32 %v477_v7  ;;  %v502_v19 = vand.u32 2147483647, %v477_v7 }
 0x789   :  { %v490_v22 = vor.u32 1.1754944e-38, %v489_v15  ;;  %vm488_vm5 = vcmp.eq.f32.partialorder %v487_v18, 8.507059e+37 }
 0x78a   :  { %v505_v23 = vor.u32 1.1754944e-38, %v504_v17  ;;  %vm503_vm6 = vcmp.eq.f32.partialorder %v502_v19, 8.507059e+37 }
 0x78d   :  { %v1217_v8 = vpop.eup %1216 }
 0x78e   :  { %v1219_v9 = vpop.eup %1218  ;;  %v479_v10 = vmul.f32 %v1217_v8, %v476_v4  ;;  %vm484_vm15 = vweird.f32 %v1217_v8 }
 0x78f   :  { %v494_v1 = vmul.f32 %v1219_v9, %v477_v7  ;;  %vm499_vm0 = vweird.f32 %v1219_v9  ;;  %vm485_vm3 = vmor %vm483_vm1, %vm484_vm15 }
 0x790   :  { %v480_v3 = vsub.f32 1.0, %v479_v10  ;;  %vm500_vm4 = vmor %vm498_vm2, %vm499_vm0  ;;  %vm1023_vm2 = vcmask 1043456  }
 0x791   :  { %v495_v5 = vsub.f32 1.0, %v494_v1 }
 0x792   :  { %v481_v6 = vmul.f32 %v1217_v8, %v480_v3 }
 0x793   :  { %v496_v11 = vmul.f32 %v1219_v9, %v495_v5 }
 0x794   :  { %v482_v12 = vadd.f32 %v1217_v8, %v481_v6 }
 0x795   :  { %v497_v13 = vadd.f32 %v1219_v9, %v496_v11 }
 0x796   :  { %v486_v20 = vsel %vm485_vm3, %v1217_v8, %v482_v12 }
 0x797   :  { %v501_v21 = vsel %vm500_vm4, %v1219_v9, %v497_v13  ;;  %v491_v25 = vsel %vm488_vm5, %v490_v22, %v486_v20 }
 0x798   :  { %v506_v27 = vsel %vm503_vm6, %v505_v23, %v501_v21  ;;  %v516_v31 = vmul.f32 %v512_v30, %v491_v25 }
 0x799   :  { %v517_v36 = vmul.f32 %v513_v35, %v506_v27 }
 0x7f5   :  { %v521_v24 = vpop.permute.xlu0 %520 }
 0x7f6   :  { %v523_v26 = vpop.permute.xlu1 %522  ;;  %v526_v28 = vmul.f32 %v521_v24, %v491_v25 }
 0x7f7   :  { %v527_v29 = vmul.f32 %v523_v26, %v506_v27 }
 0x7f8   :  { %530 = vrot.lane.b32.xlu2 %v526_v28, %s1372_s3 }
 0x7f9   :  { %532 = vrot.lane.b32.xlu0 %v527_v29, %s1372_s3 }
 0x852   :  { %v531_v32 = vpop.permute.xlu2 %530 }
 0x853   :  { %v1569_v33 = vadd.f32 %v531_v32, %v516_v31 }
 0x855   :  { %1220 = vtanh.f32 %v1569_v33  ;;  %v628_v30 = vrot.slane %v1569_v33, 7 }
 0x85b   :  { %v1221_v34 = vpop.eup %1220 }
 0x85c   :  { %542 = vrot.lane.b32.xlu1 %v1221_v34, %s1371_s20 }
 0x86b   :  { %v533_v37 = vpop.permute.xlu0 %532 }
 0x86c   :  { %v1574_v38 = vadd.f32 %v533_v37, %v517_v36 }
 0x86e   :  { %1222 = vtanh.f32 %v1574_v38 }
 0x874   :  { %v1223_v41 = vpop.eup %1222 }
 0x875   :  { %544 = vrot.lane.b32.xlu2 %v1223_v41, %s1371_s20 }
 0x8ce   :  { %v543_v39 = vpop.permute.xlu1 %542 }
 0x8cf   :  { %v545_v43 = vpop.permute.xlu2 %544  ;;  %v548_v42 = vmul.f32 %v543_v39, %v491_v25  ;;  %v629_v25 = vrot.slane %v1574_v38, 7 }
 0x8d0   :  { %v549_v44 = vmul.f32 %v545_v43, %v506_v27 }
 0x8d1   :  { %v552_v45 = vrot.slane %v548_v42, 3  ;;  %v1579_v46 = vsel %vm1020_vm7, %v1555_v50, %v548_v42 }
 0x8d2   :  { %v553_v47 = vrot.slane %v549_v44, 2  ;;  %v1582_v40 = vsel %vm1020_vm7, %v1557_v54, %v549_v44 }
 0x8d4   :  { %v554_v48 = vsel %vm207_vm9, %v553_v47, %v552_v45 }
 0x8d5   :  { %555 = vrot.lane.b32.xlu0 %v554_v48, %s1372_s3 }
 0x947   :  { %v556_v49 = vpop.permute.xlu0 %555 }
 0x948   :  { %1136 = vmatmul.msk.f32.vlgmr.msra.gmra.mxu2 %vm100_vm10, %v556_v49 }
 0x9cb   :  { %v576_v53 = vpop.f32.mrf.mxu2 }
 0x9cc   :  { %v580_v55 = vrot.slane %v576_v53, 4  ;;  %v581_v56 = vrot.slane %v576_v53, 5 }
 0x9ce   :  { %v584_v57 = vadd.f32 %v580_v55, %v1482_v16  ;;  %v585_v58 = vadd.f32 %v581_v56, %v1479_v14 }
 0x9d0   :  { %1224 = vtanh.f32 %v584_v57  ;;  %v1138_v54 = vmul.f32 -1.442695, %v585_v58  ;;  %v1137_v60 = vmul.f32 -1.442695, %v584_v57 }
 0x9d1   :  { %1226 = vtanh.f32 %v585_v58 }
 0x9d2   :  { %1228 = vpow2.f32 %v1138_v54 }
 0x9d6   :  { %v1225_v50 = vpop.eup %1224 }
 0x9d7   :  { %v1227_v62 = vpop.eup %1226  ;;  %636 = vrot.lane.b32.xlu1 %v1225_v50, %s1371_s20 }
 0x9d8   :  { %638 = vrot.lane.b32.xlu2 %v1227_v62, %s1371_s20  ;;  %v1229_v51 = vpop.eup %1228 }
 0x9d9   :  { %v593_v59 = vadd.f32 1.0, %v1229_v51 }
 0x9db   :  { %1230 = vrcp.f32 %v593_v59  ;;  %v620_v8 = vand.u32 2147483648, %v593_v59  ;;  %vm614_vm11 = vweird.f32 %v593_v59  ;;  %v618_v9 = vand.u32 2147483647, %v593_v59 }
 0x9dc   :  { %1232 = vpow2.f32 %v1137_v60 }
 0x9dd   :  { %v621_v1 = vor.u32 1.1754944e-38, %v620_v8  ;;  %vm619_vm13 = vcmp.eq.f32.partialorder %v618_v9, 8.507059e+37 }
 0x9e1   :  { %v1231_v52 = vpop.eup %1230 }
 0x9e2   :  { %v610_v61 = vmul.f32 %v1231_v52, %v593_v59  ;;  %v1233_v0 = vpop.eup %1232  ;;  %vm615_vm8 = vweird.f32 %v1231_v52 }
 0x9e3   :  { %v592_v4 = vadd.f32 1.0, %v1233_v0  ;;  %vm616_vm12 = vmor %vm614_vm11, %vm615_vm8 }
 0x9e4   :  { %v611_v63 = vsub.f32 1.0, %v610_v61 }
 0x9e5   :  { %1234 = vrcp.f32 %v592_v4  ;;  %v605_v18 = vand.u32 2147483648, %v592_v4  ;;  %vm599_vm15 = vweird.f32 %v592_v4  ;;  %v603_v19 = vand.u32 2147483647, %v592_v4 }
 0x9e6   :  { %v612_v2 = vmul.f32 %v1231_v52, %v611_v63 }
 0x9e7   :  { %v606_v21 = vor.u32 1.1754944e-38, %v605_v18  ;;  %vm604_vm1 = vcmp.eq.f32.partialorder %v603_v19, 8.507059e+37 }
 0x9e8   :  { %v613_v7 = vadd.f32 %v1231_v52, %v612_v2 }
 0x9ea   :  { %v617_v10 = vsel %vm616_vm12, %v1231_v52, %v613_v7 }
 0x9eb   :  { %v622_v5 = vsel %vm619_vm13, %v621_v1, %v617_v10  ;;  %v1235_v6 = vpop.eup %1234  ;;  %vm1026_vm13 = vcmask 1044480  }
 0x9ec   :  { %v595_v12 = vmul.f32 %v1235_v6, %v592_v4  ;;  %vm600_vm14 = vweird.f32 %v1235_v6  ;;  %v633_v26 = vmul.f32 %v629_v25, %v622_v5 }
 0x9ed   :  { %vm601_vm0 = vmor %vm599_vm15, %vm600_vm14 }
 0x9ee   :  { %v596_v13 = vsub.f32 1.0, %v595_v12 }
 0x9f0   :  { %v597_v15 = vmul.f32 %v1235_v6, %v596_v13 }
 0x9f2   :  { %v598_v17 = vadd.f32 %v1235_v6, %v597_v15 }
 0x9f4   :  { %v602_v20 = vsel %vm601_vm0, %v1235_v6, %v598_v17 }
 0x9f5   :  { %v607_v23 = vsel %vm604_vm1, %v606_v21, %v602_v20 }
 0x9f6   :  { %v632_v31 = vmul.f32 %v628_v30, %v607_v23 }
 0xa32   :  { %v639_v3 = vpop.permute.xlu2 %638 }
 0xa33   :  { %v643_v11 = vmul.f32 %v639_v3, %v622_v5 }
 0xa35   :  { %648 = vrot.lane.b32.xlu1 %v643_v11, %s1372_s3 }
 0xa49   :  { %v637_v22 = vpop.permute.xlu1 %636 }
 0xa4a   :  { %v642_v24 = vmul.f32 %v637_v22, %v607_v23 }
 0xa4c   :  { %646 = vrot.lane.b32.xlu0 %v642_v24, %s1372_s3 }
 0xaa7   :  { %v649_v27 = vpop.permute.xlu1 %648 }
 0xaa8   :  { %v1594_v28 = vadd.f32 %v649_v27, %v633_v26 }
 0xaaa   :  { %1236 = vtanh.f32 %v1594_v28  ;;  %v745_v21 = vrot.slane %v1594_v28, 7 }
 0xab0   :  { %v1237_v29 = vpop.eup %1236 }
 0xab1   :  { %660 = vrot.lane.b32.xlu0 %v1237_v29, %s1371_s20 }
 0xabe   :  { %v647_v32 = vpop.permute.xlu0 %646 }
 0xabf   :  { %v1599_v34 = vadd.f32 %v647_v32, %v632_v31 }
 0xac1   :  { %1238 = vtanh.f32 %v1599_v34  ;;  %v744_v20 = vrot.slane %v1599_v34, 7 }
 0xac7   :  { %v1239_v35 = vpop.eup %1238 }
 0xac8   :  { %658 = vrot.lane.b32.xlu2 %v1239_v35, %s1371_s20 }
 0xb22   :  { %v659_v36 = vpop.permute.xlu2 %658 }
 0xb23   :  { %v661_v37 = vpop.permute.xlu0 %660  ;;  %v664_v38 = vmul.f32 %v659_v36, %v607_v23 }
 0xb24   :  { %v665_v41 = vmul.f32 %v661_v37, %v622_v5 }
 0xb25   :  { %v668_v39 = vrot.slane %v664_v38, 4  ;;  %v1604_v43 = vsel %vm1023_vm2, %v1579_v46, %v664_v38 }
 0xb26   :  { %v669_v42 = vrot.slane %v665_v41, 3  ;;  %v1607_v33 = vsel %vm1023_vm2, %v1582_v40, %v665_v41 }
 0xb28   :  { %v670_v44 = vsel %vm207_vm9, %v669_v42, %v668_v39 }
 0xb29   :  { %671 = vrot.lane.b32.xlu1 %v670_v44, %s1372_s3 }
 0xb9b   :  { %v672_v45 = vpop.permute.xlu1 %671 }
 0xb9c   :  { %1139 = vmatmul.msk.f32.vlgmr.msra.gmra.mxu3 %vm100_vm10, %v672_v45 }
 0xc1f   :  { %v692_v47 = vpop.f32.mrf.mxu3 }
 0xc20   :  { %v696_v48 = vrot.slane %v692_v47, 3  ;;  %v697_v49 = vrot.slane %v692_v47, 4 }
 0xc22   :  { %v700_v53 = vadd.f32 %v696_v48, %v1482_v16  ;;  %v701_v55 = vadd.f32 %v697_v49, %v1479_v14 }
 0xc24   :  { %1240 = vtanh.f32 %v700_v53  ;;  %v1140_v40 = vmul.f32 -1.442695, %v700_v53  ;;  %v1141_v62 = vmul.f32 -1.442695, %v701_v55 }
 0xc25   :  { %1242 = vtanh.f32 %v701_v55 }
 0xc26   :  { %1244 = vpow2.f32 %v1140_v40 }
 0xc2a   :  { %v1241_v46 = vpop.eup %1240 }
 0xc2b   :  { %v1243_v56 = vpop.eup %1242  ;;  %752 = vrot.lane.b32.xlu2 %v1241_v46, %s1371_s20 }
 0xc2c   :  { %754 = vrot.lane.b32.xlu0 %v1243_v56, %s1371_s20  ;;  %v1245_v57 = vpop.eup %1244 }
 0xc2d   :  { %v708_v58 = vadd.f32 1.0, %v1245_v57 }
 0xc2f   :  { %1246 = vrcp.f32 %v708_v58  ;;  %v721_v63 = vand.u32 2147483648, %v708_v58  ;;  %vm715_vm4 = vweird.f32 %v708_v58  ;;  %v719_v0 = vand.u32 2147483647, %v708_v58 }
 0xc30   :  { %1248 = vpow2.f32 %v1141_v62 }
 0xc31   :  { %v722_v4 = vor.u32 1.1754944e-38, %v721_v63  ;;  %vm720_vm6 = vcmp.eq.f32.partialorder %v719_v0, 8.507059e+37 }
 0xc35   :  { %v1247_v50 = vpop.eup %1246 }
 0xc36   :  { %v711_v54 = vmul.f32 %v1247_v50, %v708_v58  ;;  %v1249_v52 = vpop.eup %1248  ;;  %vm716_vm3 = vweird.f32 %v1247_v50 }
 0xc37   :  { %v709_v60 = vadd.f32 1.0, %v1249_v52  ;;  %vm717_vm5 = vmor %vm715_vm4, %vm716_vm3 }
 0xc38   :  { %v712_v51 = vsub.f32 1.0, %v711_v54 }
 0xc39   :  { %1250 = vrcp.f32 %v709_v60  ;;  %v736_v11 = vand.u32 2147483648, %v709_v60  ;;  %vm730_vm8 = vweird.f32 %v709_v60  ;;  %v734_v12 = vand.u32 2147483647, %v709_v60 }
 0xc3a   :  { %v713_v59 = vmul.f32 %v1247_v50, %v712_v51 }
 0xc3b   :  { %v737_v15 = vor.u32 1.1754944e-38, %v736_v11  ;;  %vm735_vm12 = vcmp.eq.f32.partialorder %v734_v12, 8.507059e+37 }
 0xc3c   :  { %v714_v61 = vadd.f32 %v1247_v50, %v713_v59 }
 0xc3e   :  { %v718_v2 = vsel %vm717_vm5, %v1247_v50, %v714_v61 }
 0xc3f   :  { %v723_v8 = vsel %vm720_vm6, %v722_v4, %v718_v2  ;;  %v1251_v10 = vpop.eup %1250  ;;  %vm1029_vm6 = vcmask 1045504  }
 0xc40   :  { %v726_v1 = vmul.f32 %v1251_v10, %v709_v60  ;;  %vm731_vm7 = vweird.f32 %v1251_v10  ;;  %v748_v22 = vmul.f32 %v744_v20, %v723_v8 }
 0xc41   :  { %vm732_vm11 = vmor %vm730_vm8, %vm731_vm7 }
 0xc42   :  { %v727_v3 = vsub.f32 1.0, %v726_v1 }
 0xc44   :  { %v728_v5 = vmul.f32 %v1251_v10, %v727_v3 }
 0xc46   :  { %v729_v6 = vadd.f32 %v1251_v10, %v728_v5 }
 0xc48   :  { %v733_v13 = vsel %vm732_vm11, %v1251_v10, %v729_v6 }
 0xc49   :  { %v738_v18 = vsel %vm735_vm12, %v737_v15, %v733_v13 }
 0xc4a   :  { %v749_v23 = vmul.f32 %v745_v21, %v738_v18 }
 0xc85   :  { %v753_v7 = vpop.permute.xlu2 %752 }
 0xc86   :  { %v758_v9 = vmul.f32 %v753_v7, %v723_v8 }
 0xc88   :  { %762 = vrot.lane.b32.xlu1 %v758_v9, %s1372_s3 }
 0xc9e   :  { %v755_v17 = vpop.permute.xlu0 %754 }
 0xc9f   :  { %v759_v19 = vmul.f32 %v755_v17, %v738_v18 }
 0xca1   :  { %764 = vrot.lane.b32.xlu2 %v759_v19, %s1372_s3 }
 0xcfa   :  { %v763_v24 = vpop.permute.xlu1 %762 }
 0xcfb   :  { %v765_v25 = vpop.permute.xlu2 %764  ;;  %v1620_v26 = vadd.f32 %v763_v24, %v748_v22 }
 0xcfc   :  { %v1622_v27 = vadd.f32 %v765_v25, %v749_v23 }
 0xcfd   :  { %1252 = vtanh.f32 %v1620_v26  ;;  %v860_v13 = vrot.slane %v1620_v26, 7 }
 0xcfe   :  { %1254 = vtanh.f32 %v1622_v27  ;;  %v861_v20 = vrot.slane %v1622_v27, 7 }
 0xd03   :  { %v1253_v29 = vpop.eup %1252 }
 0xd04   :  { %v1255_v30 = vpop.eup %1254  ;;  %774 = vrot.lane.b32.xlu0 %v1253_v29, %s1371_s20 }
 0xd05   :  { %776 = vrot.lane.b32.xlu1 %v1255_v30, %s1371_s20 }
 0xd76   :  { %v775_v28 = vpop.permute.xlu0 %774 }
 0xd77   :  { %v777_v31 = vpop.permute.xlu1 %776  ;;  %v780_v32 = vmul.f32 %v775_v28, %v723_v8 }
 0xd78   :  { %v781_v34 = vmul.f32 %v777_v31, %v738_v18 }
 0xd79   :  { %v784_v35 = vrot.slane %v780_v32, 5  ;;  %v1629_v36 = vsel %vm1026_vm13, %v1604_v43, %v780_v32 }
 0xd7a   :  { %v785_v37 = vrot.slane %v781_v34, 4  ;;  %v1632_v38 = vsel %vm1026_vm13, %v1607_v33, %v781_v34 }
 0xd7c   :  { %v786_v41 = vsel %vm207_vm9, %v785_v37, %v784_v35 }
 0xd7d   :  { %787 = vrot.lane.b32.xlu2 %v786_v41, %s1372_s3 }
 0xdd7   :  { %v788_v39 = vpop.permute.xlu2 %787 }
 0xdd8   :  { %1142 = vmatmul.msk.f32.vlgmr.msrb.gmra.mxu0 %vm100_vm10, %v788_v39 }
 0xe55   :  { %v808_v42 = vpop.f32.mrf.mxu0 }
 0xe56   :  { %v812_v44 = vrot.slane %v808_v42, 2  ;;  %v813_v45 = vrot.slane %v808_v42, 3 }
 0xe58   :  { %v816_v47 = vadd.f32 %v812_v44, %v1482_v16  ;;  %v817_v48 = vadd.f32 %v813_v45, %v1479_v14 }
 0xe5a   :  { %1256 = vtanh.f32 %v816_v47  ;;  %v1143_v33 = vmul.f32 -1.442695, %v816_v47  ;;  %v1144_v53 = vmul.f32 -1.442695, %v817_v48 }
 0xe5b   :  { %1258 = vtanh.f32 %v817_v48 }
 0xe5c   :  { %1260 = vpow2.f32 %v1143_v33 }
 0xe5d   :  { %1262 = vpow2.f32 %v1144_v53 }
 0xe60   :  { %v1257_v43 = vpop.eup %1256 }
 0xe61   :  { %v1259_v49 = vpop.eup %1258  ;;  %868 = vrot.lane.b32.xlu0 %v1257_v43, %s1371_s20 }
 0xe62   :  { %870 = vrot.lane.b32.xlu1 %v1259_v49, %s1371_s20  ;;  %v1261_v55 = vpop.eup %1260 }
 0xe63   :  { %v1263_v46 = vpop.eup %1262  ;;  %v824_v56 = vadd.f32 1.0, %v1261_v55 }
 0xe64   :  { %v825_v40 = vadd.f32 1.0, %v1263_v46 }
 0xe65   :  { %1264 = vrcp.f32 %v824_v56  ;;  %v837_v63 = vand.u32 2147483648, %v824_v56  ;;  %vm831_vm0 = vweird.f32 %v824_v56  ;;  %v835_v2 = vand.u32 2147483647, %v824_v56 }
 0xe66   :  { %1266 = vrcp.f32 %v825_v40  ;;  %v852_v0 = vand.u32 2147483648, %v825_v40  ;;  %vm846_vm1 = vweird.f32 %v825_v40  ;;  %v850_v4 = vand.u32 2147483647, %v825_v40 }
 0xe67   :  { %v838_v9 = vor.u32 1.1754944e-38, %v837_v63  ;;  %vm836_vm4 = vcmp.eq.f32.partialorder %v835_v2, 8.507059e+37 }
 0xe68   :  { %v853_v10 = vor.u32 1.1754944e-38, %v852_v0  ;;  %vm851_vm5 = vcmp.eq.f32.partialorder %v850_v4, 8.507059e+37 }
 0xe6b   :  { %v1265_v57 = vpop.eup %1264 }
 0xe6c   :  { %v1267_v58 = vpop.eup %1266  ;;  %v827_v50 = vmul.f32 %v1265_v57, %v824_v56  ;;  %vm832_vm14 = vweird.f32 %v1265_v57 }
 0xe6d   :  { %v842_v62 = vmul.f32 %v1267_v58, %v825_v40  ;;  %vm847_vm15 = vweird.f32 %v1267_v58  ;;  %vm833_vm2 = vmor %vm831_vm0, %vm832_vm14  ;;  %vm1032_vm0 = vcmask 1046528  }
 0xe6e   :  { %v828_v54 = vsub.f32 1.0, %v827_v50  ;;  %vm848_vm3 = vmor %vm846_vm1, %vm847_vm15  ;;  %vm1095_vm1 = vcmask 523271  }
 0xe6f   :  { %v843_v51 = vsub.f32 1.0, %v842_v62 }
 0xe70   :  { %v829_v59 = vmul.f32 %v1265_v57, %v828_v54 }
 0xe71   :  { %v844_v52 = vmul.f32 %v1267_v58, %v843_v51 }
 0xe72   :  { %v830_v60 = vadd.f32 %v1265_v57, %v829_v59 }
 0xe73   :  { %v845_v61 = vadd.f32 %v1267_v58, %v844_v52 }
 0xe74   :  { %v834_v7 = vsel %vm833_vm2, %v1265_v57, %v830_v60  ;;  %vm1097_vm2 = vcmask 516096  }
 0xe75   :  { %v849_v8 = vsel %vm848_vm3, %v1267_v58, %v845_v61  ;;  %v839_v3 = vsel %vm836_vm4, %v838_v9, %v834_v7  ;;  %vm1076_vm3 = vcmask 64512  }
 0xe76   :  { %v854_v6 = vsel %vm851_vm5, %v853_v10, %v849_v8  ;;  %v864_v15 = vmul.f32 %v860_v13, %v839_v3 }
 0xe77   :  { %v865_v21 = vmul.f32 %v861_v20, %v854_v6 }
 0xed3   :  { %v869_v1 = vpop.permute.xlu0 %868 }
 0xed4   :  { %v871_v5 = vpop.permute.xlu1 %870  ;;  %v874_v11 = vmul.f32 %v869_v1, %v839_v3 }
 0xed5   :  { %v875_v12 = vmul.f32 %v871_v5, %v854_v6 }
 0xed6   :  { %878 = vrot.lane.b32.xlu2 %v874_v11, %s1372_s3 }
 0xed7   :  { %880 = vrot.lane.b32.xlu0 %v875_v12, %s1372_s3 }
 0xf30   :  { %v879_v17 = vpop.permute.xlu2 %878 }
 0xf31   :  { %v1644_v18 = vadd.f32 %v879_v17, %v864_v15 }
 0xf33   :  { %1268 = vtanh.f32 %v1644_v18  ;;  %v976_v11 = vrot.slane %v1644_v18, 7 }
 0xf39   :  { %v1269_v19 = vpop.eup %1268 }
 0xf3a   :  { %890 = vrot.lane.b32.xlu1 %v1269_v19, %s1371_s20 }
 0xf49   :  { %v881_v22 = vpop.permute.xlu0 %880 }
 0xf4a   :  { %v1649_v23 = vadd.f32 %v881_v22, %v865_v21 }
 0xf4c   :  { %1270 = vtanh.f32 %v1649_v23  ;;  %v977_v10 = vrot.slane %v1649_v23, 7 }
 0xf52   :  { %v1271_v24 = vpop.eup %1270 }
 0xf53   :  { %892 = vrot.lane.b32.xlu2 %v1271_v24, %s1371_s20 }
 0xfac   :  { %v891_v25 = vpop.permute.xlu1 %890 }
 0xfad   :  { %v893_v26 = vpop.permute.xlu2 %892  ;;  %v896_v29 = vmul.f32 %v891_v25, %v839_v3  ;;  %v1038_v25 = vld [vmem:[%s1713_s4 + $0x18] sm:$0xff] }
 0xfae   :  { %v897_v30 = vmul.f32 %v893_v26, %v854_v6  ;;  %v1037_v26 = vld [vmem:[%s1713_s4 + $0x10] sm:$0xff]  ;;  %1065 = vmatpush.msrb.mxu2 %v1038_v25 }
 0xfaf   :  { %v900_v28 = vrot.slane %v896_v29, 6  ;;  %v1654_v31 = vsel %vm1029_vm6, %v1629_v36, %v896_v29  ;;  %v1036_v29 = vld [vmem:[%s1713_s4 + $0x8] sm:$0xff] }
 0xfb0   :  { %v901_v32 = vrot.slane %v897_v30, 5  ;;  %v1657_v27 = vsel %vm1029_vm6, %v1632_v38, %v897_v30  ;;  %1066 = vmatpush.msrb.mxu2 %v1037_v26  ;;  %v1035_v30 = vld [vmem:[%s1713_s4] sm:$0xff] }
 0xfb2   :  { %v902_v34 = vsel %vm207_vm9, %v901_v32, %v900_v28  ;;  %1067 = vmatpush.msrb.mxu2 %v1036_v29 }
 0xfb3   :  { %903 = vrot.lane.b32.xlu0 %v902_v34, %s1372_s3 }
 0xfb4   :  { %1068 = vmatpush.msrb.mxu2 %v1035_v30 }
0x1025   :  { %v904_v35 = vpop.permute.xlu0 %903 }
0x1026   :  { %1145 = vmatmul.msk.f32.vlgmr.msra.gmra.mxu1 %vm100_vm10, %v904_v35 }
0x10a3   :  { %v924_v37 = vpop.f32.mrf.mxu1 }
0x10a4   :  { %v928_v41 = vrot.slane %v924_v37, 1  ;;  %v929_v39 = vrot.slane %v924_v37, 2 }
0x10a6   :  { %v932_v42 = vadd.f32 %v928_v41, %v1482_v16  ;;  %v933_v44 = vadd.f32 %v929_v39, %v1479_v14  ;;  %v1159_v41 = vld [vmem:[%s1714_s5] ss:$0 sm:$0xff] }
0x10a8   :  { %1272 = vtanh.f32 %v932_v42  ;;  %v1147_v38 = vmul.f32 -1.442695, %v933_v44  ;;  %v1146_v49 = vmul.f32 -1.442695, %v932_v42 }
0x10a9   :  { %1274 = vtanh.f32 %v933_v44 }
0x10aa   :  { %1276 = vpow2.f32 %v1147_v38 }
0x10ae   :  { %v1273_v36 = vpop.eup %1272 }
0x10af   :  { %v1275_v45 = vpop.eup %1274  ;;  %984 = vrot.lane.b32.xlu1 %v1273_v36, %s1371_s20 }
0x10b0   :  { %986 = vrot.lane.b32.xlu2 %v1275_v45, %s1371_s20  ;;  %v1277_v47 = vpop.eup %1276 }
0x10b1   :  { %v941_v48 = vadd.f32 1.0, %v1277_v47 }
0x10b3   :  { %1278 = vrcp.f32 %v941_v48  ;;  %v968_v56 = vand.u32 2147483648, %v941_v48  ;;  %vm962_vm7 = vweird.f32 %v941_v48  ;;  %v966_v40 = vand.u32 2147483647, %v941_v48 }
0x10b4   :  { %1280 = vpow2.f32 %v1146_v49 }
0x10b5   :  { %v969_v58 = vor.u32 1.1754944e-38, %v968_v56  ;;  %vm967_vm11 = vcmp.eq.f32.partialorder %v966_v40, 8.507059e+37 }
0x10b9   :  { %v1279_v43 = vpop.eup %1278 }
0x10ba   :  { %v958_v33 = vmul.f32 %v1279_v43, %v941_v48  ;;  %v1281_v53 = vpop.eup %1280  ;;  %vm963_vm9 = vweird.f32 %v1279_v43 }
0x10bb   :  { %v940_v55 = vadd.f32 1.0, %v1281_v53  ;;  %vm964_vm8 = vmor %vm962_vm7, %vm963_vm9 }
0x10bc   :  { %v959_v16 = vsub.f32 1.0, %v958_v33 }
0x10bd   :  { %1282 = vrcp.f32 %v940_v55  ;;  %v953_v63 = vand.u32 2147483648, %v940_v55  ;;  %vm947_vm13 = vweird.f32 %v940_v55  ;;  %v951_v0 = vand.u32 2147483647, %v940_v55 }
0x10be   :  { %v960_v14 = vmul.f32 %v1279_v43, %v959_v16 }
0x10bf   :  { %v954_v4 = vor.u32 1.1754944e-38, %v953_v63  ;;  %vm952_vm15 = vcmp.eq.f32.partialorder %v951_v0, 8.507059e+37 }
0x10c0   :  { %v961_v46 = vadd.f32 %v1279_v43, %v960_v14 }
0x10c2   :  { %v965_v57 = vsel %vm964_vm8, %v1279_v43, %v961_v46 }
0x10c3   :  { %v970_v62 = vsel %vm967_vm11, %v969_v58, %v965_v57  ;;  %v1283_v54 = vpop.eup %1282 }
0x10c4   :  { %v943_v59 = vmul.f32 %v1283_v54, %v940_v55  ;;  %vm948_vm12 = vweird.f32 %v1283_v54  ;;  %v981_v1 = vmul.f32 %v977_v10, %v970_v62 }
0x10c5   :  { %vm949_vm14 = vmor %vm947_vm13, %vm948_vm12 }
0x10c6   :  { %v944_v52 = vsub.f32 1.0, %v943_v59 }
0x10c8   :  { %v945_v60 = vmul.f32 %v1283_v54, %v944_v52 }
0x10ca   :  { %v946_v61 = vadd.f32 %v1283_v54, %v945_v60 }
0x10cc   :  { %v950_v2 = vsel %vm949_vm14, %v1283_v54, %v946_v61 }
0x10cd   :  { %v955_v8 = vsel %vm952_vm15, %v954_v4, %v950_v2 }
0x10ce   :  { %v980_v12 = vmul.f32 %v976_v11, %v955_v8 }
0x110a   :  { %v987_v50 = vpop.permute.xlu2 %986 }
0x110b   :  { %v991_v51 = vmul.f32 %v987_v50, %v970_v62 }
0x110d   :  { %996 = vrot.lane.b32.xlu1 %v991_v51, %s1372_s3 }
0x1121   :  { %v985_v7 = vpop.permute.xlu1 %984 }
0x1122   :  { %v990_v9 = vmul.f32 %v985_v7, %v955_v8 }
0x1124   :  { %994 = vrot.lane.b32.xlu0 %v990_v9, %s1372_s3 }
0x117f   :  { %v997_v3 = vpop.permute.xlu1 %996 }
0x1180   :  { %v1001_v5 = vadd.f32 %v997_v3, %v981_v1 }
0x1182   :  { %1284 = vtanh.f32 %v1001_v5 }
0x1188   :  { %v1285_v6 = vpop.eup %1284 }
0x1189   :  { %1008 = vrot.lane.b32.xlu0 %v1285_v6, %s1371_s20 }
0x1196   :  { %v995_v13 = vpop.permute.xlu0 %994 }
0x1197   :  { %v1000_v15 = vadd.f32 %v995_v13, %v980_v12 }
0x1199   :  { %1286 = vtanh.f32 %v1000_v15 }
0x119f   :  { %v1287_v17 = vpop.eup %1286 }
0x11a0   :  { %1006 = vrot.lane.b32.xlu2 %v1287_v17, %s1371_s20 }
0x11fa   :  { %v1007_v19 = vpop.permute.xlu2 %1006 }
0x11fb   :  { %v1009_v20 = vpop.permute.xlu0 %1008  ;;  %v1012_v21 = vmul.f32 %v1007_v19, %v955_v8 }
0x11fc   :  { %v1013_v22 = vmul.f32 %v1009_v20, %v970_v62 }
0x11fd   :  { %1082 = vrot.lane.b32.xlu0 %v1012_v21, %s1372_s3  ;;  %v1033_v23 = vsel %vm1032_vm0, %v1654_v31, %v1012_v21 }
0x11fe   :  { %v1034_v24 = vsel %vm1032_vm0, %v1657_v27, %v1013_v22  ;;  %1045 = vrot.lane.b32.xlu1 %v1033_v23, %s1372_s3  ;;  %v1081_v18 = vrot.slane %v1013_v22, 7  ;;  %v1090_v27 = vrot.slane %v1001_v5, 7 }
0x11ff   :  { %1047 = vrot.lane.b32.xlu2 %v1034_v24, %s1372_s3 }
0x1206   :  { %1084 = vrot.lane.b32.xlu1 %v1081_v18, %s1372_s3 }
0x1259   :  { %v1048_v34 = vpop.permute.xlu2 %1047 }
0x126f   :  { %v1083_v28 = vpop.permute.xlu0 %1082 }
0x1270   :  { %v1093_v31 = vsel %vm100_vm10, %v1083_v28, %v1000_v15  ;;  %v1046_v32 = vpop.permute.xlu1 %1045 }
0x1271   :  { %1096 = vst.msk [vmem:[%s1716_s7 - $0x7] sm:$0x80] %vm1095_vm1, %v1093_v31  ;;  %1148 = vmatmul.msk.f32.vlgmr.msrb.gmra.mxu2 %vm100_vm10, %v1046_v32 }
0x1278   :  { %v1085_v35 = vpop.permute.xlu1 %1084 }
0x1279   :  { %v1094_v37 = vsel %vm100_vm10, %v1085_v35, %v1090_v27  ;;  %1149 = vmatmul.msk.f32.gmra.mxu2 %vm100_vm10, %v1048_v34 }
0x127a   :  { %1098 = vst.msk [vmem:[%s1716_s7 + $0x1] sm:$0x1] %vm1097_vm2, %v1094_v37 }
0x12f4   :  { %v1070_v39 = vpop.f32.mrf.mxu2 }
0x12f5   :  { %v1071_v42 = vadd.f32 %v1159_v41, %v1070_v39 }
0x12f7   :  { %1077 = vst.msk [vmem:[#allocation7] sm:$0xff] %vm1076_vm3, %v1071_v42 }
0x12fc   :  { %v1073_v44 = vpop.f32.mrf.mxu2 }
0x12fd   :  { %v1074_v36 = vadd.f32 %v1159_v41, %v1073_v44 }
0x12ff   :  { %1078 = vst.msk [vmem:[#allocation7 + $0x8] sm:$0xff] %vm1076_vm3, %v1074_v36 }
0x1300   :  { %1111 = dma.vmem_to_hbm [thread:$0]  %s1104_s1, 256, %s1106_s15, [#allocation4], %s1367_s9, %s1367_s9, %s1368_s10  }
0x1301   :  { %1364 = dma.done.wait [#allocation4], 256  }
0x1302   :  { %1365 = vsyncadd [#allocation4], 4294967040 }
0x1303   :  { %1120 = vsyncpa [#allocation3], 1 }
0x1304   :  { %1121 = vsyncpa [#allocation6], 1 }
0x1305   :  { %1122 = vsyncpa [#allocation4], 1 }

</bundles_post_ra>
